<compile_context>
chip_gen: v5e
topology: v5e:2x2
jax: 0.10.0
libtpu: 0.0.40
codegen_flags: <defaults>
</compile_context>

<pallas_src>
import functools

import jax
import jax.numpy as jnp
from jax.experimental import pallas as pl
from jax.experimental.pallas import tpu as pltpu


# ----------------------------------------------------------------------------
# Shared LSTM recurrence (VMEM-resident refs; (h, c) carried in vregs).
# Gate column order is (i, f, o, g): one sigmoid covers lanes [0:3H], one tanh
# covers lanes [3H:4H].
# ----------------------------------------------------------------------------
def _lstm_scan(xp_ref, whh, hseq_ref, hdim, t_steps, bsz):
    def step(t, carry):
        h, c = carry
        gates = xp_ref[t] + jnp.dot(h.astype(jnp.bfloat16), whh,
                                    preferred_element_type=jnp.float32)  # (B, 4H)
        sig = jax.nn.sigmoid(gates[:, :3 * hdim])
        gi = sig[:, 0 * hdim:1 * hdim]
        gf = sig[:, 1 * hdim:2 * hdim]
        go = sig[:, 2 * hdim:3 * hdim]
        gg = jnp.tanh(gates[:, 3 * hdim:4 * hdim])
        c = gf * c + gi * gg
        h = go * jnp.tanh(c)
        hseq_ref[t] = h
        return h, c

    init = (jnp.zeros((bsz, hdim), jnp.float32),
            jnp.zeros((bsz, hdim), jnp.float32))
    jax.lax.fori_loop(0, t_steps, step, init)


# ----------------------------------------------------------------------------
# Fused kernel: embedding (one-hot matmul) -> char-convs (one MXU pass) ->
# max/tanh -> Highway -> LSTM input projection -> LSTM recurrence -> decoder.
# ----------------------------------------------------------------------------
def _char_lm_fused_kernel(filter_sizes, filter_channels, hdim, t_steps, bsz,
                          fold_decoder,
                          chars_ref, emb_ref, wc_ref, bc_ref, hww_ref, hwb_ref,
                          wih_ref, bl_ref, whh_ref, *rest):
    if fold_decoder:
        fcw_ref, fcb_ref, out_ref, y_ref, xp_ref, hseq_ref = rest
    else:
        out_ref, y_ref, xp_ref, hseq_ref = rest

    n_words = t_steps * bsz
    wn = chars_ref.shape[0]
    w_chars = wn // n_words
    vocab = emb_ref.shape[0]
    ktot = wc_ref.shape[1]
    sum_c = bc_ref.shape[1]
    four_h = 4 * hdim

    # --- embedding lookup as a one-hot MXU matmul (no XLA gather glue) -------
    idx = chars_ref[...]                                        # (W*N, 1) int32
    iota = jax.lax.broadcasted_iota(jnp.int32, (wn, vocab), 1)
    one_hot = jnp.where(iota == idx, 1.0, 0.0).astype(jnp.bfloat16)
    x2d = jnp.dot(one_hot, emb_ref[...],
                  preferred_element_type=jnp.float32).astype(jnp.bfloat16)  # (W*N, E)

    # --- ALL conv filters/offsets in ONE (W*N, E) x (E, ktot) MXU pass -------
    y = jnp.dot(x2d, wc_ref[...], preferred_element_type=jnp.float32)
    y_ref[...] = y.reshape(w_chars, n_words, ktot)              # VMEM-resident

    # --- per filter: sum offset-shifted slices, max over positions -----------
    # The position-independent bias and tanh commute with the max, so both are
    # applied once on the lane-dense concatenated features below.
    maxes = []
    col = 0
    for f, c in zip(filter_sizes, filter_channels):
        p = w_chars - f + 1
        acc = y_ref[pl.ds(0, p), :, pl.ds(col, c)]              # offset 0
        for o in range(1, f):
            acc = acc + y_ref[pl.ds(o, p), :, pl.ds(col + o * c, c)]
        maxes.append(jnp.max(acc, axis=0))                      # (N, c)
        col += f * c
    feat = jnp.tanh(jnp.concatenate(maxes, axis=-1) + bc_ref[...])   # (N, sum_c)

    # --- Highway: y = g*x + (1-g)*relu(A(x)), g = sigmoid(B(x)) --------------
    hw_pre = jnp.dot(feat.astype(jnp.bfloat16), hww_ref[...],
                     preferred_element_type=jnp.float32) + hwb_ref[...]
    nonlin = jnp.maximum(hw_pre[:, :sum_c], 0.0)
    gate = jax.nn.sigmoid(hw_pre[:, sum_c:])
    hw = gate * feat + (1.0 - gate) * nonlin                    # (N, sum_c)

    # --- hoisted (time-independent) LSTM input projection --------------------
    xproj = jnp.dot(hw.astype(jnp.bfloat16), wih_ref[...],
                    preferred_element_type=jnp.float32) + bl_ref[...]     # (N, 4H)
    xp_ref[...] = xproj.reshape(t_steps, bsz, four_h)

    # --- LSTM recurrence (serial over T, VMEM-resident) ----------------------
    _lstm_scan(xp_ref, whh_ref[...], hseq_ref, hdim, t_steps, bsz)

    # --- epilogue: fold the decoder, or emit the bf16 hidden sequence --------
    if fold_decoder:
        hseq = hseq_ref[...].reshape(n_words, hdim).astype(jnp.bfloat16)
        out_ref[...] = (jnp.dot(hseq, fcw_ref[...],
                                preferred_element_type=jnp.float32) + fcb_ref[...])
    else:
        out_ref[...] = hseq_ref[...].astype(out_ref.dtype)


def fused_char_lstm(chars_col, emb, conv_w, conv_b, hw_w, hw_b, wih, b_lstm, whh,
                    fc_w, fc_b, filter_sizes, filter_channels, hdim, t_steps, bsz,
                    fold_decoder):
    wn = chars_col.shape[0]
    n = t_steps * bsz
    w_chars = wn // n
    vocab, e = emb.shape
    ktot = conv_w.shape[1]
    sum_c = conv_b.shape[1]
    four_h = 4 * hdim

    kernel = functools.partial(_char_lm_fused_kernel, tuple(filter_sizes),
                               tuple(filter_channels), hdim, t_steps, bsz,
                               fold_decoder)

    inputs = [chars_col, emb, conv_w, conv_b, hw_w, hw_b, wih, b_lstm, whh]
    in_specs = [
        pl.BlockSpec((wn, 1), lambda i: (0, 0)),
        pl.BlockSpec((vocab, e), lambda i: (0, 0)),
        pl.BlockSpec((e, ktot), lambda i: (0, 0)),
        pl.BlockSpec((1, sum_c), lambda i: (0, 0)),
        pl.BlockSpec((sum_c, 2 * sum_c), lambda i: (0, 0)),
        pl.BlockSpec((1, 2 * sum_c), lambda i: (0, 0)),
        pl.BlockSpec((sum_c, four_h), lambda i: (0, 0)),
        pl.BlockSpec((1, four_h), lambda i: (0, 0)),
        pl.BlockSpec((hdim, four_h), lambda i: (0, 0)),
    ]
    if fold_decoder:
        out_dim = fc_w.shape[1]
        inputs += [fc_w, fc_b]
        in_specs += [pl.BlockSpec((hdim, out_dim), lambda i: (0, 0)),
                     pl.BlockSpec((1, out_dim), lambda i: (0, 0))]
        out_shape = jax.ShapeDtypeStruct((n, out_dim), jnp.float32)
        out_spec = pl.BlockSpec((n, out_dim), lambda i: (0, 0))
    else:
        out_shape = jax.ShapeDtypeStruct((t_steps, bsz, hdim), jnp.bfloat16)
        out_spec = pl.BlockSpec((t_steps, bsz, hdim), lambda i: (0, 0, 0))

    # NOTE: at demo shapes the (8,128) block constraints force a single full
    # block; for realistic T*B this call would be tiled over T with (h, c)
    # carried in VMEM scratch across an "arbitrary" grid axis.
    return pl.pallas_call(
        kernel,
        out_shape=out_shape,
        grid=(1,),
        in_specs=in_specs,
        out_specs=out_spec,
        scratch_shapes=[
            pltpu.VMEM((w_chars, n, ktot), jnp.float32),      # conv projections
            pltpu.VMEM((t_steps, bsz, four_h), jnp.float32),  # hoisted LSTM x-proj
            pltpu.VMEM((t_steps, bsz, hdim), jnp.float32),    # LSTM hidden sequence
        ],
        compiler_params=pltpu.CompilerParams(
            dimension_semantics=("arbitrary",),
            vmem_limit_bytes=32 * 1024 * 1024),
    )(*inputs)


# ----------------------------------------------------------------------------
# LSTM layer >= 2 (multi-layer configs only): hoisted x-projection + recurrence
# fused into one call, bf16 output.
# ----------------------------------------------------------------------------
def _lstm_layer_kernel(hdim, x_ref, wih_ref, whh_ref, bl_ref, out_ref,
                       xp_ref, hseq_ref):
    t_steps, bsz, hin = x_ref.shape
    x2 = x_ref[...].reshape(t_steps * bsz, hin)
    xproj = jnp.dot(x2, wih_ref[...], preferred_element_type=jnp.float32) + bl_ref[...]
    xp_ref[...] = xproj.reshape(t_steps, bsz, 4 * hdim)
    _lstm_scan(xp_ref, whh_ref[...], hseq_ref, hdim, t_steps, bsz)
    out_ref[...] = hseq_ref[...].astype(out_ref.dtype)


def lstm_layer(x_seq, wih, whh, b, hdim):
    t_steps, bsz, hin = x_seq.shape
    four_h = 4 * hdim
    return pl.pallas_call(
        functools.partial(_lstm_layer_kernel, hdim),
        out_shape=jax.ShapeDtypeStruct((t_steps, bsz, hdim), jnp.bfloat16),
        grid=(1,),
        in_specs=[pl.BlockSpec((t_steps, bsz, hin), lambda i: (0, 0, 0)),
                  pl.BlockSpec((hin, four_h), lambda i: (0, 0)),
                  pl.BlockSpec((hdim, four_h), lambda i: (0, 0)),
                  pl.BlockSpec((1, four_h), lambda i: (0, 0))],
        out_specs=pl.BlockSpec((t_steps, bsz, hdim), lambda i: (0, 0, 0)),
        scratch_shapes=[pltpu.VMEM((t_steps, bsz, four_h), jnp.float32),
                        pltpu.VMEM((t_steps, bsz, hdim), jnp.float32)],
        compiler_params=pltpu.CompilerParams(
            dimension_semantics=("arbitrary",),
            vmem_limit_bytes=32 * 1024 * 1024),
    )(x_seq, wih, whh, b)


# ----------------------------------------------------------------------------
# Tiled decoder fallback (only used when the decoder is too large to fold into
# the last LSTM kernel): cdiv-style grid with padded edge tiles, bf16 cast done
# inside the kernel.
# ----------------------------------------------------------------------------
def _linear_kernel(x_ref, w_ref, b_ref, o_ref):
    o_ref[...] = (jnp.dot(x_ref[...].astype(jnp.bfloat16), w_ref[...],
                          preferred_element_type=jnp.float32) + b_ref[...])


def linear(x, w, b, *, tn=256, to=1024):
    n, d = x.shape
    o = w.shape[1]
    tn = min(tn, n)
    to = min(to, o)
    n_pad = (-n) % tn
    o_pad = (-o) % to
    xp = jnp.pad(x, ((0, n_pad), (0, 0))) if n_pad else x
    wp = jnp.pad(w, ((0, 0), (0, o_pad))) if o_pad else w
    bp = jnp.pad(b, ((0, 0), (0, o_pad))) if o_pad else b
    npd, opd = n + n_pad, o + o_pad
    out = pl.pallas_call(
        _linear_kernel,
        out_shape=jax.ShapeDtypeStruct((npd, opd), jnp.float32),
        grid=(npd // tn, opd // to),
        in_specs=[pl.BlockSpec((tn, d), lambda i, j: (i, 0)),
                  pl.BlockSpec((d, to), lambda i, j: (0, j)),
                  pl.BlockSpec((1, to), lambda i, j: (0, j))],
        out_specs=pl.BlockSpec((tn, to), lambda i, j: (i, j)),
        compiler_params=pltpu.CompilerParams(
            dimension_semantics=("parallel", "parallel"),
            vmem_limit_bytes=32 * 1024 * 1024),
    )(xp, wp, bp)
    return out[:n, :o] if (n_pad or o_pad) else out


# ----------------------------------------------------------------------------
# Full forward pass.
# ----------------------------------------------------------------------------
FOLD_DECODER_MAX_OUT = 8192   # fold fc into the fused kernel when out_dim is modest


def char_lm_forward(chars, params, filter_sizes, filter_channels, rnn_dim):
    t_steps, bsz, w_chars = chars.shape
    n = t_steps * bsz
    # Char indices, char-position-major (row j*N + n), as a (W*N, 1) column so
    # the in-kernel one-hot embedding matmul needs no further layout work.
    chars_col = chars.transpose(2, 0, 1).reshape(w_chars * n, 1)

    wih0, whh0, b0 = params["lstm"][0]
    single_layer = len(params["lstm"]) == 1
    fold = single_layer and params["fc_w"].shape[1] <= FOLD_DECODER_MAX_OUT

    out = fused_char_lstm(
        chars_col, params["emb"], params["conv_w"], params["conv_b"],
        params["hw_w"], params["hw_b"], wih0, b0, whh0,
        params["fc_w"] if fold else None, params["fc_b"] if fold else None,
        filter_sizes, filter_channels, rnn_dim, t_steps, bsz, fold_decoder=fold)
    if fold:
        return out                                      # (T*B, out_dim) logits

    h_seq = out                                         # (T, B, H) bf16
    for (wih, whh, b) in params["lstm"][1:]:
        # TODO(synk): nn.LSTM's train-mode inter-layer dropout is stochastic; not applied.
        h_seq = lstm_layer(h_seq, wih, whh, b, rnn_dim)
    return linear(h_seq.reshape(n, rnn_dim), params["fc_w"], params["fc_b"])


# ----------------------------------------------------------------------------
# Deterministic parameter construction (PyTorch-default-style uniform init).
# ----------------------------------------------------------------------------
def _uniform(key, shape, bound):
    return jax.random.uniform(key, shape, jnp.float32, -bound, bound)


def build_params(key, vocab, out_dim, emb_dim, filter_sizes, filter_channels,
                 rnn_dim, rnn_layers):
    sum_c = sum(filter_channels)
    keys = iter(jax.random.split(key, 128))
    params = {}
    params["emb"] = jax.random.normal(next(keys), (vocab, emb_dim),
                                      jnp.float32).astype(jnp.bfloat16)

    # Packed conv weight: columns per (filter, offset, channel); the (E, C_f)
    # block at offset o equals the torch conv weight (C,1,f,E)[:, 0, o, :].T.
    blocks, biases = [], []
    for f, c in zip(filter_sizes, filter_channels):
        bound = 1.0 / (f * emb_dim) ** 0.5
        for _o in range(f):
            blocks.append(_uniform(next(keys), (emb_dim, c), bound))
        biases.append(_uniform(next(keys), (1, c), bound))
    params["conv_w"] = jnp.concatenate(blocks, axis=1).astype(jnp.bfloat16)
    params["conv_b"] = jnp.concatenate(biases, axis=1)                  # f32

    bound = 1.0 / sum_c ** 0.5
    hw_w = jnp.concatenate([_uniform(next(keys), (sum_c, sum_c), bound),    # A (nonlin)
                            _uniform(next(keys), (sum_c, sum_c), bound)],   # B (gate)
                           axis=1)
    params["hw_w"] = hw_w.astype(jnp.bfloat16)
    params["hw_b"] = jnp.concatenate([_uniform(next(keys), (1, sum_c), bound),
                                      jnp.ones((1, sum_c), jnp.float32)],   # gate bias = 1
                                     axis=1)

    # LSTM weights with gates stacked along columns in (i, f, o, g) order (the
    # kernel's convention); b = b_ih + b_hh combined.
    lstm = []
    d_in = sum_c
    bound = 1.0 / rnn_dim ** 0.5
    for _ in range(rnn_layers):
        wih = _uniform(next(keys), (d_in, 4 * rnn_dim), bound).astype(jnp.bfloat16)
        whh = _uniform(next(keys), (rnn_dim, 4 * rnn_dim), bound).astype(jnp.bfloat16)
        b = _uniform(next(keys), (1, 4 * rnn_dim), bound)
        lstm.append((wih, whh, b))
        d_in = rnn_dim
    params["lstm"] = lstm

    params["fc_w"] = _uniform(next(keys), (rnn_dim, out_dim), bound).astype(jnp.bfloat16)
    params["fc_b"] = _uniform(next(keys), (1, out_dim), bound)
    return params


if __name__ == "__main__":
    # CharLM hyper-parameters (small, consistent with the module)
    vocab, out_dim, emb_dim = 50, 50, 16
    filter_sizes = (1, 2, 3, 4, 5, 6)
    filter_channels = (4, 4, 8, 8, 8, 8)      # sum = 40
    rnn_dim, rnn_layers = 32, 1               # 4H = 128 (lane-dense gate matmul)

    t_steps, bsz, w_chars = 8, 2, 10          # chars: (seq, batch, word_len)

    key = jax.random.PRNGKey(0)
    kp, kc = jax.random.split(key)
    params = build_params(kp, vocab, out_dim, emb_dim, filter_sizes,
                          filter_channels, rnn_dim, rnn_layers)
    chars = jax.random.randint(kc, (t_steps, bsz, w_chars), 0, vocab, dtype=jnp.int32)

    fwd = jax.jit(functools.partial(char_lm_forward,
                                    filter_sizes=filter_sizes,
                                    filter_channels=filter_channels,
                                    rnn_dim=rnn_dim))
    decoded = fwd(chars, params)
    jax.block_until_ready(decoded)

    assert decoded.shape == (t_steps * bsz, out_dim), decoded.shape
    assert decoded.dtype == jnp.float32
    assert bool(jnp.all(jnp.isfinite(decoded)))
    print("KERNEL_OK")
</pallas_src>

<mosaic_0001>
module attributes {stable_mosaic.version = 11 : i64} {
  func.func @_char_lm_fused_kernel(%arg0: i32, %arg1: memref<160x1xi32, #tpu.memory_space<vmem>>, %arg2: memref<50x16xbf16, #tpu.memory_space<vmem>>, %arg3: memref<16x156xbf16, #tpu.memory_space<vmem>>, %arg4: memref<1x40xf32, #tpu.memory_space<vmem>>, %arg5: memref<40x80xbf16, #tpu.memory_space<vmem>>, %arg6: memref<1x80xf32, #tpu.memory_space<vmem>>, %arg7: memref<40x128xbf16, #tpu.memory_space<vmem>>, %arg8: memref<1x128xf32, #tpu.memory_space<vmem>>, %arg9: memref<32x128xbf16, #tpu.memory_space<vmem>>, %arg10: memref<32x50xbf16, #tpu.memory_space<vmem>>, %arg11: memref<1x50xf32, #tpu.memory_space<vmem>>, %arg12: memref<16x50xf32, #tpu.memory_space<vmem>>, %arg13: memref<10x16x156xf32, #tpu.memory_space<vmem>>, %arg14: memref<8x2x128xf32, #tpu.memory_space<vmem>>, %arg15: memref<8x2x32xf32, #tpu.memory_space<vmem>>) attributes {dimension_semantics = [#tpu.dimension_semantics<arbitrary>], iteration_bounds = array<i64: 1>, scalar_prefetch = 0 : i64, scratch_operands = 3 : i64, tpu.core_type = #tpu.core_type<tc>, window_params = [{pipeline_mode = #tpu.pipeline_mode<synchronous>, transform_indices = @transform_0, window_bounds = array<i64: 160, 1>}, {pipeline_mode = #tpu.pipeline_mode<synchronous>, transform_indices = @transform_1, window_bounds = array<i64: 50, 16>}, {pipeline_mode = #tpu.pipeline_mode<synchronous>, transform_indices = @transform_2, window_bounds = array<i64: 16, 156>}, {pipeline_mode = #tpu.pipeline_mode<synchronous>, transform_indices = @transform_3, window_bounds = array<i64: 1, 40>}, {pipeline_mode = #tpu.pipeline_mode<synchronous>, transform_indices = @transform_4, window_bounds = array<i64: 40, 80>}, {pipeline_mode = #tpu.pipeline_mode<synchronous>, transform_indices = @transform_5, window_bounds = array<i64: 1, 80>}, {pipeline_mode = #tpu.pipeline_mode<synchronous>, transform_indices = @transform_6, window_bounds = array<i64: 40, 128>}, {pipeline_mode = #tpu.pipeline_mode<synchronous>, transform_indices = @transform_7, window_bounds = array<i64: 1, 128>}, {pipeline_mode = #tpu.pipeline_mode<synchronous>, transform_indices = @transform_8, window_bounds = array<i64: 32, 128>}, {pipeline_mode = #tpu.pipeline_mode<synchronous>, transform_indices = @transform_9, window_bounds = array<i64: 32, 50>}, {pipeline_mode = #tpu.pipeline_mode<synchronous>, transform_indices = @transform_10, window_bounds = array<i64: 1, 50>}, {pipeline_mode = #tpu.pipeline_mode<synchronous>, transform_indices = @transform_11, window_bounds = array<i64: 16, 50>}]} {
    %c0 = arith.constant 0 : index
    %c0_0 = arith.constant 0 : index
    %0 = vector.load %arg1[%c0, %c0_0] : memref<160x1xi32, #tpu.memory_space<vmem>>, vector<160x1xi32>
    %1 = tpu.iota {dimensions = array<i32: 1>} : vector<160x50xi32>
    %2 = vector.broadcast %0 : vector<160x1xi32> to vector<160x50xi32>
    %3 = arith.cmpi eq, %1, %2 : vector<160x50xi32>
    %cst = arith.constant 1.000000e+00 : f32
    %cst_1 = arith.constant 0.000000e+00 : f32
    %4 = vector.broadcast %cst : f32 to vector<160x50xf32>
    %5 = vector.broadcast %cst_1 : f32 to vector<160x50xf32>
    %6 = arith.select %3, %4, %5 : vector<160x50xi1>, vector<160x50xf32>
    %7 = arith.truncf %6 : vector<160x50xf32> to vector<160x50xbf16>
    %c0_2 = arith.constant 0 : index
    %c0_3 = arith.constant 0 : index
    %8 = vector.load %arg2[%c0_2, %c0_3] : memref<50x16xbf16, #tpu.memory_space<vmem>>, vector<50x16xbf16>
    %cst_4 = arith.constant dense<0.000000e+00> : vector<160x16xf32>
    %9 = tpu.matmul %7, %8, %cst_4 {dimension_numbers = #tpu.dot_dimension_numbers<[1], [0], [0], [1], [0, 0, 1, 1], [], []>} : vector<160x50xbf16>, vector<50x16xbf16>, vector<160x16xf32> -> vector<160x16xf32>
    %10 = arith.truncf %9 : vector<160x16xf32> to vector<160x16xbf16>
    %c0_5 = arith.constant 0 : index
    %c0_6 = arith.constant 0 : index
    %11 = vector.load %arg3[%c0_5, %c0_6] : memref<16x156xbf16, #tpu.memory_space<vmem>>, vector<16x156xbf16>
    %cst_7 = arith.constant dense<0.000000e+00> : vector<160x156xf32>
    %12 = tpu.matmul %10, %11, %cst_7 {dimension_numbers = #tpu.dot_dimension_numbers<[1], [0], [0], [1], [0, 0, 1, 1], [], []>} : vector<160x16xbf16>, vector<16x156xbf16>, vector<160x156xf32> -> vector<160x156xf32>
    %13 = vector.shape_cast %12 : vector<160x156xf32> to vector<10x16x156xf32>
    %c0_8 = arith.constant 0 : index
    %c0_9 = arith.constant 0 : index
    %c0_10 = arith.constant 0 : index
    %14 = vector.load %arg13[%c0_8, %c0_9, %c0_10] : memref<10x16x156xf32, #tpu.memory_space<vmem>>, vector<10x16x156xf32>
    tpu.vector_store %arg13[%c0_8, %c0_9, %c0_10], %13 {strides = array<i32>} : memref<10x16x156xf32, #tpu.memory_space<vmem>>, vector<10x16x156xf32>,
    %c0_11 = arith.constant 0 : index
    %c0_12 = arith.constant 0 : index
    %c0_13 = arith.constant 0 : index
    %15 = vector.load %arg13[%c0_11, %c0_12, %c0_13] : memref<10x16x156xf32, #tpu.memory_space<vmem>>, vector<10x16x4xf32>
    %cst_14 = arith.constant dense<0xFF800000> : vector<16x4xf32>
    %16 = vector.multi_reduction <maximumf>, %15, %cst_14 [0] : vector<10x16x4xf32> to vector<16x4xf32>
    %c0_15 = arith.constant 0 : index
    %c0_16 = arith.constant 0 : index
    %c4 = arith.constant 4 : index
    %17 = vector.load %arg13[%c0_15, %c0_16, %c4] : memref<10x16x156xf32, #tpu.memory_space<vmem>>, vector<9x16x4xf32>
    %c1 = arith.constant 1 : index
    %c0_17 = arith.constant 0 : index
    %c8 = arith.constant 8 : index
    %18 = vector.load %arg13[%c1, %c0_17, %c8] : memref<10x16x156xf32, #tpu.memory_space<vmem>>, vector<9x16x4xf32>
    %19 = arith.addf %17, %18 : vector<9x16x4xf32>
    %cst_18 = arith.constant dense<0xFF800000> : vector<16x4xf32>
    %20 = vector.multi_reduction <maximumf>, %19, %cst_18 [0] : vector<9x16x4xf32> to vector<16x4xf32>
    %c0_19 = arith.constant 0 : index
    %c0_20 = arith.constant 0 : index
    %c12 = arith.constant 12 : index
    %21 = vector.load %arg13[%c0_19, %c0_20, %c12] : memref<10x16x156xf32, #tpu.memory_space<vmem>>, vector<8x16x8xf32>
    %c1_21 = arith.constant 1 : index
    %c0_22 = arith.constant 0 : index
    %c20 = arith.constant 20 : index
    %22 = vector.load %arg13[%c1_21, %c0_22, %c20] : memref<10x16x156xf32, #tpu.memory_space<vmem>>, vector<8x16x8xf32>
    %23 = arith.addf %21, %22 : vector<8x16x8xf32>
    %c2 = arith.constant 2 : index
    %c0_23 = arith.constant 0 : index
    %c28 = arith.constant 28 : index
    %24 = vector.load %arg13[%c2, %c0_23, %c28] : memref<10x16x156xf32, #tpu.memory_space<vmem>>, vector<8x16x8xf32>
    %25 = arith.addf %23, %24 : vector<8x16x8xf32>
    %cst_24 = arith.constant dense<0xFF800000> : vector<16x8xf32>
    %26 = vector.multi_reduction <maximumf>, %25, %cst_24 [0] : vector<8x16x8xf32> to vector<16x8xf32>
    %c0_25 = arith.constant 0 : index
    %c0_26 = arith.constant 0 : index
    %c36 = arith.constant 36 : index
    %27 = vector.load %arg13[%c0_25, %c0_26, %c36] : memref<10x16x156xf32, #tpu.memory_space<vmem>>, vector<7x16x8xf32>
    %c1_27 = arith.constant 1 : index
    %c0_28 = arith.constant 0 : index
    %c44 = arith.constant 44 : index
    %28 = vector.load %arg13[%c1_27, %c0_28, %c44] : memref<10x16x156xf32, #tpu.memory_space<vmem>>, vector<7x16x8xf32>
    %29 = arith.addf %27, %28 : vector<7x16x8xf32>
    %c2_29 = arith.constant 2 : index
    %c0_30 = arith.constant 0 : index
    %c52 = arith.constant 52 : index
    %30 = vector.load %arg13[%c2_29, %c0_30, %c52] : memref<10x16x156xf32, #tpu.memory_space<vmem>>, vector<7x16x8xf32>
    %31 = arith.addf %29, %30 : vector<7x16x8xf32>
    %c3 = arith.constant 3 : index
    %c0_31 = arith.constant 0 : index
    %c60 = arith.constant 60 : index
    %32 = vector.load %arg13[%c3, %c0_31, %c60] : memref<10x16x156xf32, #tpu.memory_space<vmem>>, vector<7x16x8xf32>
    %33 = arith.addf %31, %32 : vector<7x16x8xf32>
    %cst_32 = arith.constant dense<0xFF800000> : vector<16x8xf32>
    %34 = vector.multi_reduction <maximumf>, %33, %cst_32 [0] : vector<7x16x8xf32> to vector<16x8xf32>
    %c0_33 = arith.constant 0 : index
    %c0_34 = arith.constant 0 : index
    %c68 = arith.constant 68 : index
    %35 = vector.load %arg13[%c0_33, %c0_34, %c68] : memref<10x16x156xf32, #tpu.memory_space<vmem>>, vector<6x16x8xf32>
    %c1_35 = arith.constant 1 : index
    %c0_36 = arith.constant 0 : index
    %c76 = arith.constant 76 : index
    %36 = vector.load %arg13[%c1_35, %c0_36, %c76] : memref<10x16x156xf32, #tpu.memory_space<vmem>>, vector<6x16x8xf32>
    %37 = arith.addf %35, %36 : vector<6x16x8xf32>
    %c2_37 = arith.constant 2 : index
    %c0_38 = arith.constant 0 : index
    %c84 = arith.constant 84 : index
    %38 = vector.load %arg13[%c2_37, %c0_38, %c84] : memref<10x16x156xf32, #tpu.memory_space<vmem>>, vector<6x16x8xf32>
    %39 = arith.addf %37, %38 : vector<6x16x8xf32>
    %c3_39 = arith.constant 3 : index
    %c0_40 = arith.constant 0 : index
    %c92 = arith.constant 92 : index
    %40 = vector.load %arg13[%c3_39, %c0_40, %c92] : memref<10x16x156xf32, #tpu.memory_space<vmem>>, vector<6x16x8xf32>
    %41 = arith.addf %39, %40 : vector<6x16x8xf32>
    %c4_41 = arith.constant 4 : index
    %c0_42 = arith.constant 0 : index
    %c100 = arith.constant 100 : index
    %42 = vector.load %arg13[%c4_41, %c0_42, %c100] : memref<10x16x156xf32, #tpu.memory_space<vmem>>, vector<6x16x8xf32>
    %43 = arith.addf %41, %42 : vector<6x16x8xf32>
    %cst_43 = arith.constant dense<0xFF800000> : vector<16x8xf32>
    %44 = vector.multi_reduction <maximumf>, %43, %cst_43 [0] : vector<6x16x8xf32> to vector<16x8xf32>
    %c0_44 = arith.constant 0 : index
    %c0_45 = arith.constant 0 : index
    %c108 = arith.constant 108 : index
    %45 = vector.load %arg13[%c0_44, %c0_45, %c108] : memref<10x16x156xf32, #tpu.memory_space<vmem>>, vector<5x16x8xf32>
    %c1_46 = arith.constant 1 : index
    %c0_47 = arith.constant 0 : index
    %c116 = arith.constant 116 : index
    %46 = vector.load %arg13[%c1_46, %c0_47, %c116] : memref<10x16x156xf32, #tpu.memory_space<vmem>>, vector<5x16x8xf32>
    %47 = arith.addf %45, %46 : vector<5x16x8xf32>
    %c2_48 = arith.constant 2 : index
    %c0_49 = arith.constant 0 : index
    %c124 = arith.constant 124 : index
    %48 = vector.load %arg13[%c2_48, %c0_49, %c124] : memref<10x16x156xf32, #tpu.memory_space<vmem>>, vector<5x16x8xf32>
    %49 = arith.addf %47, %48 : vector<5x16x8xf32>
    %c3_50 = arith.constant 3 : index
    %c0_51 = arith.constant 0 : index
    %c132 = arith.constant 132 : index
    %50 = vector.load %arg13[%c3_50, %c0_51, %c132] : memref<10x16x156xf32, #tpu.memory_space<vmem>>, vector<5x16x8xf32>
    %51 = arith.addf %49, %50 : vector<5x16x8xf32>
    %c4_52 = arith.constant 4 : index
    %c0_53 = arith.constant 0 : index
    %c140 = arith.constant 140 : index
    %52 = vector.load %arg13[%c4_52, %c0_53, %c140] : memref<10x16x156xf32, #tpu.memory_space<vmem>>, vector<5x16x8xf32>
    %53 = arith.addf %51, %52 : vector<5x16x8xf32>
    %c5 = arith.constant 5 : index
    %c0_54 = arith.constant 0 : index
    %c148 = arith.constant 148 : index
    %54 = vector.load %arg13[%c5, %c0_54, %c148] : memref<10x16x156xf32, #tpu.memory_space<vmem>>, vector<5x16x8xf32>
    %55 = arith.addf %53, %54 : vector<5x16x8xf32>
    %cst_55 = arith.constant dense<0xFF800000> : vector<16x8xf32>
    %56 = vector.multi_reduction <maximumf>, %55, %cst_55 [0] : vector<5x16x8xf32> to vector<16x8xf32>
    %57 = tpu.concatenate %16, %20, %26, %34, %44, %56 in 1 : vector<16x4xf32>, vector<16x4xf32>, vector<16x8xf32>, vector<16x8xf32>, vector<16x8xf32>, vector<16x8xf32> -> vector<16x40xf32>
    %c0_56 = arith.constant 0 : index
    %c0_57 = arith.constant 0 : index
    %58 = vector.load %arg4[%c0_56, %c0_57] : memref<1x40xf32, #tpu.memory_space<vmem>>, vector<1x40xf32>
    %59 = vector.broadcast %58 : vector<1x40xf32> to vector<16x40xf32>
    %60 = arith.addf %57, %59 : vector<16x40xf32>
    %61 = math.tanh %60 : vector<16x40xf32>
    %62 = arith.truncf %61 : vector<16x40xf32> to vector<16x40xbf16>
    %c0_58 = arith.constant 0 : index
    %c0_59 = arith.constant 0 : index
    %63 = vector.load %arg5[%c0_58, %c0_59] : memref<40x80xbf16, #tpu.memory_space<vmem>>, vector<40x80xbf16>
    %cst_60 = arith.constant dense<0.000000e+00> : vector<16x80xf32>
    %64 = tpu.matmul %62, %63, %cst_60 {dimension_numbers = #tpu.dot_dimension_numbers<[1], [0], [0], [1], [0, 0, 1, 1], [], []>} : vector<16x40xbf16>, vector<40x80xbf16>, vector<16x80xf32> -> vector<16x80xf32>
    %c0_61 = arith.constant 0 : index
    %c0_62 = arith.constant 0 : index
    %65 = vector.load %arg6[%c0_61, %c0_62] : memref<1x80xf32, #tpu.memory_space<vmem>>, vector<1x80xf32>
    %66 = vector.broadcast %65 : vector<1x80xf32> to vector<16x80xf32>
    %67 = arith.addf %64, %66 : vector<16x80xf32>
    %68 = vector.extract_strided_slice %67 {offsets = [0, 0], sizes = [16, 40], strides = [1, 1]} : vector<16x80xf32> to vector<16x40xf32>
    %cst_63 = arith.constant 0.000000e+00 : f32
    %69 = vector.broadcast %cst_63 : f32 to vector<16x40xf32>
    %70 = arith.maximumf %68, %69 : vector<16x40xf32>
    %71 = vector.extract_strided_slice %67 {offsets = [0, 40], sizes = [16, 40], strides = [1, 1]} : vector<16x80xf32> to vector<16x40xf32>
    %72 = arith.negf %71 : vector<16x40xf32>
    %73 = math.exp %72 : vector<16x40xf32>
    %cst_64 = arith.constant 1.000000e+00 : f32
    %74 = vector.broadcast %cst_64 : f32 to vector<16x40xf32>
    %75 = arith.addf %74, %73 : vector<16x40xf32>
    %76 = arith.divf %74, %75 : vector<16x40xf32>
    %77 = arith.mulf %76, %61 : vector<16x40xf32>
    %cst_65 = arith.constant 1.000000e+00 : f32
    %78 = vector.broadcast %cst_65 : f32 to vector<16x40xf32>
    %79 = arith.subf %78, %76 : vector<16x40xf32>
    %80 = arith.mulf %79, %70 : vector<16x40xf32>
    %81 = arith.addf %77, %80 : vector<16x40xf32>
    %82 = arith.truncf %81 : vector<16x40xf32> to vector<16x40xbf16>
    %c0_66 = arith.constant 0 : index
    %c0_67 = arith.constant 0 : index
    %83 = vector.load %arg7[%c0_66, %c0_67] : memref<40x128xbf16, #tpu.memory_space<vmem>>, vector<40x128xbf16>
    %cst_68 = arith.constant dense<0.000000e+00> : vector<16x128xf32>
    %84 = tpu.matmul %82, %83, %cst_68 {dimension_numbers = #tpu.dot_dimension_numbers<[1], [0], [0], [1], [0, 0, 1, 1], [], []>} : vector<16x40xbf16>, vector<40x128xbf16>, vector<16x128xf32> -> vector<16x128xf32>
    %c0_69 = arith.constant 0 : index
    %c0_70 = arith.constant 0 : index
    %85 = vector.load %arg8[%c0_69, %c0_70] : memref<1x128xf32, #tpu.memory_space<vmem>>, vector<1x128xf32>
    %86 = vector.broadcast %85 : vector<1x128xf32> to vector<16x128xf32>
    %87 = arith.addf %84, %86 : vector<16x128xf32>
    %88 = vector.shape_cast %87 : vector<16x128xf32> to vector<8x2x128xf32>
    %c0_71 = arith.constant 0 : index
    %c0_72 = arith.constant 0 : index
    %c0_73 = arith.constant 0 : index
    %89 = vector.load %arg14[%c0_71, %c0_72, %c0_73] : memref<8x2x128xf32, #tpu.memory_space<vmem>>, vector<8x2x128xf32>
    tpu.vector_store %arg14[%c0_71, %c0_72, %c0_73], %88 {strides = array<i32>} : memref<8x2x128xf32, #tpu.memory_space<vmem>>, vector<8x2x128xf32>,
    %c0_74 = arith.constant 0 : index
    %c0_75 = arith.constant 0 : index
    %90 = vector.load %arg9[%c0_74, %c0_75] : memref<32x128xbf16, #tpu.memory_space<vmem>>, vector<32x128xbf16>
    %cst_76 = arith.constant 0.000000e+00 : f32
    %91 = vector.broadcast %cst_76 : f32 to vector<2x32xf32>
    %cst_77 = arith.constant 0.000000e+00 : f32
    %92 = vector.broadcast %cst_77 : f32 to vector<2x32xf32>
    %c0_i32 = arith.constant 0 : i32
    %c8_i32 = arith.constant 8 : i32
    %93 = arith.addi %c0_i32, %c8_i32 : i32
    %c1_i32 = arith.constant 1 : i32
    %94:2 = scf.for %arg16 = %c0_i32 to %93 step %c1_i32 iter_args(%arg17 = %91, %arg18 = %92) -> (vector<2x32xf32>, vector<2x32xf32>)  : i32 {
      %104 = arith.index_cast %arg16 : i32 to index
      %c0_89 = arith.constant 0 : index
      %c0_90 = arith.constant 0 : index
      %105 = vector.load %arg14[%104, %c0_89, %c0_90] : memref<8x2x128xf32, #tpu.memory_space<vmem>>, vector<1x2x128xf32>
      %106 = vector.shape_cast %105 : vector<1x2x128xf32> to vector<2x128xf32>
      %107 = arith.truncf %arg17 : vector<2x32xf32> to vector<2x32xbf16>
      %cst_91 = arith.constant dense<0.000000e+00> : vector<2x128xf32>
      %108 = tpu.matmul %107, %90, %cst_91 {dimension_numbers = #tpu.dot_dimension_numbers<[1], [0], [0], [1], [0, 0, 1, 1], [], []>} : vector<2x32xbf16>, vector<32x128xbf16>, vector<2x128xf32> -> vector<2x128xf32>
      %109 = arith.addf %106, %108 : vector<2x128xf32>
      %110 = vector.extract_strided_slice %109 {offsets = [0, 0], sizes = [2, 96], strides = [1, 1]} : vector<2x128xf32> to vector<2x96xf32>
      %111 = arith.negf %110 : vector<2x96xf32>
      %112 = math.exp %111 : vector<2x96xf32>
      %cst_92 = arith.constant 1.000000e+00 : f32
      %113 = vector.broadcast %cst_92 : f32 to vector<2x96xf32>
      %114 = arith.addf %113, %112 : vector<2x96xf32>
      %115 = arith.divf %113, %114 : vector<2x96xf32>
      %116 = vector.extract_strided_slice %115 {offsets = [0, 0], sizes = [2, 32], strides = [1, 1]} : vector<2x96xf32> to vector<2x32xf32>
      %117 = vector.extract_strided_slice %115 {offsets = [0, 32], sizes = [2, 32], strides = [1, 1]} : vector<2x96xf32> to vector<2x32xf32>
      %118 = vector.extract_strided_slice %115 {offsets = [0, 64], sizes = [2, 32], strides = [1, 1]} : vector<2x96xf32> to vector<2x32xf32>
      %119 = vector.extract_strided_slice %109 {offsets = [0, 96], sizes = [2, 32], strides = [1, 1]} : vector<2x128xf32> to vector<2x32xf32>
      %120 = math.tanh %119 : vector<2x32xf32>
      %121 = arith.mulf %117, %arg18 : vector<2x32xf32>
      %122 = arith.mulf %116, %120 : vector<2x32xf32>
      %123 = arith.addf %121, %122 : vector<2x32xf32>
      %124 = math.tanh %123 : vector<2x32xf32>
      %125 = arith.mulf %118, %124 : vector<2x32xf32>
      %126 = arith.index_cast %arg16 : i32 to index
      %c0_93 = arith.constant 0 : index
      %c0_94 = arith.constant 0 : index
      %127 = vector.load %arg15[%126, %c0_93, %c0_94] : memref<8x2x32xf32, #tpu.memory_space<vmem>>, vector<1x2x32xf32>
      %128 = vector.shape_cast %127 : vector<1x2x32xf32> to vector<2x32xf32>
      %129 = vector.shape_cast %125 : vector<2x32xf32> to vector<1x2x32xf32>
      tpu.vector_store %arg15[%126, %c0_93, %c0_94], %129 {strides = array<i32>} : memref<8x2x32xf32, #tpu.memory_space<vmem>>, vector<1x2x32xf32>,
      scf.yield %125, %123 : vector<2x32xf32>, vector<2x32xf32>
    }
    %c8_i32_78 = arith.constant 8 : i32
    %c0_79 = arith.constant 0 : index
    %c0_80 = arith.constant 0 : index
    %c0_81 = arith.constant 0 : index
    %95 = vector.load %arg15[%c0_79, %c0_80, %c0_81] : memref<8x2x32xf32, #tpu.memory_space<vmem>>, vector<8x2x32xf32>
    %96 = vector.shape_cast %95 : vector<8x2x32xf32> to vector<16x32xf32>
    %97 = arith.truncf %96 : vector<16x32xf32> to vector<16x32xbf16>
    %c0_82 = arith.constant 0 : index
    %c0_83 = arith.constant 0 : index
    %98 = vector.load %arg10[%c0_82, %c0_83] : memref<32x50xbf16, #tpu.memory_space<vmem>>, vector<32x50xbf16>
    %cst_84 = arith.constant dense<0.000000e+00> : vector<16x50xf32>
    %99 = tpu.matmul %97, %98, %cst_84 {dimension_numbers = #tpu.dot_dimension_numbers<[1], [0], [0], [1], [0, 0, 1, 1], [], []>} : vector<16x32xbf16>, vector<32x50xbf16>, vector<16x50xf32> -> vector<16x50xf32>
    %c0_85 = arith.constant 0 : index
    %c0_86 = arith.constant 0 : index
    %100 = vector.load %arg11[%c0_85, %c0_86] : memref<1x50xf32, #tpu.memory_space<vmem>>, vector<1x50xf32>
    %101 = vector.broadcast %100 : vector<1x50xf32> to vector<16x50xf32>
    %102 = arith.addf %99, %101 : vector<16x50xf32>
    %c0_87 = arith.constant 0 : index
    %c0_88 = arith.constant 0 : index
    %103 = vector.load %arg12[%c0_87, %c0_88] : memref<16x50xf32, #tpu.memory_space<vmem>>, vector<16x50xf32>
    tpu.vector_store %arg12[%c0_87, %c0_88], %102 {strides = array<i32>} : memref<16x50xf32, #tpu.memory_space<vmem>>, vector<16x50xf32>,
    return
  }
  func.func @transform_0(%arg0: i32) -> (i32, i32) {
    %c0_i32 = arith.constant 0 : i32
    %c0_i32_0 = arith.constant 0 : i32
    %c0_i32_1 = arith.constant 0 : i32
    return %c0_i32, %c0_i32_0 : i32, i32
  }
  func.func @transform_1(%arg0: i32) -> (i32, i32) {
    %c0_i32 = arith.constant 0 : i32
    %c0_i32_0 = arith.constant 0 : i32
    %c0_i32_1 = arith.constant 0 : i32
    return %c0_i32, %c0_i32_0 : i32, i32
  }
  func.func @transform_2(%arg0: i32) -> (i32, i32) {
    %c0_i32 = arith.constant 0 : i32
    %c0_i32_0 = arith.constant 0 : i32
    %c0_i32_1 = arith.constant 0 : i32
    return %c0_i32, %c0_i32_0 : i32, i32
  }
  func.func @transform_3(%arg0: i32) -> (i32, i32) {
    %c0_i32 = arith.constant 0 : i32
    %c0_i32_0 = arith.constant 0 : i32
    %c0_i32_1 = arith.constant 0 : i32
    return %c0_i32, %c0_i32_0 : i32, i32
  }
  func.func @transform_4(%arg0: i32) -> (i32, i32) {
    %c0_i32 = arith.constant 0 : i32
    %c0_i32_0 = arith.constant 0 : i32
    %c0_i32_1 = arith.constant 0 : i32
    return %c0_i32, %c0_i32_0 : i32, i32
  }
  func.func @transform_5(%arg0: i32) -> (i32, i32) {
    %c0_i32 = arith.constant 0 : i32
    %c0_i32_0 = arith.constant 0 : i32
    %c0_i32_1 = arith.constant 0 : i32
    return %c0_i32, %c0_i32_0 : i32, i32
  }
  func.func @transform_6(%arg0: i32) -> (i32, i32) {
    %c0_i32 = arith.constant 0 : i32
    %c0_i32_0 = arith.constant 0 : i32
    %c0_i32_1 = arith.constant 0 : i32
    return %c0_i32, %c0_i32_0 : i32, i32
  }
  func.func @transform_7(%arg0: i32) -> (i32, i32) {
    %c0_i32 = arith.constant 0 : i32
    %c0_i32_0 = arith.constant 0 : i32
    %c0_i32_1 = arith.constant 0 : i32
    return %c0_i32, %c0_i32_0 : i32, i32
  }
  func.func @transform_8(%arg0: i32) -> (i32, i32) {
    %c0_i32 = arith.constant 0 : i32
    %c0_i32_0 = arith.constant 0 : i32
    %c0_i32_1 = arith.constant 0 : i32
    return %c0_i32, %c0_i32_0 : i32, i32
  }
  func.func @transform_9(%arg0: i32) -> (i32, i32) {
    %c0_i32 = arith.constant 0 : i32
    %c0_i32_0 = arith.constant 0 : i32
    %c0_i32_1 = arith.constant 0 : i32
    return %c0_i32, %c0_i32_0 : i32, i32
  }
  func.func @transform_10(%arg0: i32) -> (i32, i32) {
    %c0_i32 = arith.constant 0 : i32
    %c0_i32_0 = arith.constant 0 : i32
    %c0_i32_1 = arith.constant 0 : i32
    return %c0_i32, %c0_i32_0 : i32, i32
  }
  func.func @transform_11(%arg0: i32) -> (i32, i32) {
    %c0_i32 = arith.constant 0 : i32
    %c0_i32_0 = arith.constant 0 : i32
    %c0_i32_1 = arith.constant 0 : i32
    return %c0_i32, %c0_i32_0 : i32, i32
  }
}

</mosaic_0001>

<bundles_post_ra>
// kernel: char_lm_forward.1
= control target key start
LH: loop header
LB: loop body
LE: loop exit
PB: predicated region body
PF: predicated region fallthrough
CT: control target
= control target key end

     0   :  { %v2056_v3 = vmov 0   ;;  %s3145_s0 = inlined_call_operand.vmem [shape: s32[160,1], index: 0, kind: input, shape index: {}]   ;;  %s3146_s1 = inlined_call_operand.vmem [shape: bf16[50,16], index: 1, kind: input, shape index: {}]   ;;  %s3147_s2 = inlined_call_operand.vmem [shape: bf16[16,156], index: 2, kind: input, shape index: {}]   ;;  %s3148_s3 = inlined_call_operand.vmem [shape: f32[1,40], index: 3, kind: input, shape index: {}]   ;;  %s3149_s4 = inlined_call_operand.vmem [shape: bf16[40,80], index: 4, kind: input, shape index: {}]   ;;  %s3150_s5 = inlined_call_operand.vmem [shape: f32[1,80], index: 5, kind: input, shape index: {}]   ;;  %s3151_s6 = inlined_call_operand.vmem [shape: bf16[40,128], index: 6, kind: input, shape index: {}]   ;;  %s3152_s7 = inlined_call_operand.vmem [shape: f32[1,128], index: 7, kind: input, shape index: {}]   ;;  %s3153_s8 = inlined_call_operand.vmem [shape: bf16[32,128], index: 8, kind: input, shape index: {}]   ;;  %s3154_s9 = inlined_call_operand.vmem [shape: bf16[32,50], index: 9, kind: input, shape index: {}]   ;;  %s3155_s10 = inlined_call_operand.vmem [shape: f32[1,50], index: 10, kind: input, shape index: {}]   ;;  %s3156_s11 = inlined_call_operand.hbm [shape: f32[16,50], index: 11, kind: output, shape index: {}]  }
   0x1   :  { %v44_v0 = vld [vmem:[%s3145_s0 + $0x20] sm:$0xff]  ;;  %v42_v1 = vld [vmem:[%s3145_s0 + $0x10] sm:$0xff]  ;;  %1966 = vset.pattern.permute.xlu2 %v2056_v3  ;;  %1965 = vset.pattern.permute.xlu1 %v2056_v3 }
   0x2   :  { %v40_v2 = vld [vmem:[%s3145_s0] sm:$0xff]  ;;  %1964 = vset.pattern.permute.xlu0 %v2056_v3  ;;  %75 = vperm.xlu2 %1966, %v44_v0  }
   0x3   :  { %69 = vperm.xlu1 %1965, %v42_v1   ;;  %63 = vperm.xlu0 %1964, %v40_v2  }
   0x4   :  { %16 = vsyncpa [#allocation6], 0  ;;  %v45_v4 = vld [vmem:[%s3145_s0 + $0x28] sm:$0xff]  ;;  %v43_v5 = vld [vmem:[%s3145_s0 + $0x18] sm:$0xff]  ;;  %vm231_vm0 = vcmask 1040384   ;;  %v60_v29 = vlaneseq  ;;  %v2057_v36 = vmov 0.0  }
   0x5   :  { %v41_v6 = vld [vmem:[%s3145_s0 + $0x8] sm:$0xff]  ;;  %v48_v7 = vld [vmem:[%s3145_s0 + $0x40] sm:$0xff]  ;;  %v47_v8 = vld [vmem:[%s3145_s0 + $0x38] sm:$0xff]  ;;  %vm200_vm3 = vcmask 408576   ;;  %s2059_s14 = smov 120   ;;  %s2060_s15 = smov 112  }
   0x6   :  { %v46_v9 = vld [vmem:[%s3145_s0 + $0x30] sm:$0xff]  ;;  %v51_v10 = vld [vmem:[%s3145_s0 + $0x58] sm:$0xff]  ;;  %v49_v12 = vld [vmem:[%s3145_s0 + $0x48] sm:$0xff]  ;;  %v2205_v32 = vand.u32 127, %v60_v29  ;;  %s2061_s16 = smov 96   ;;  %s2062_s17 = smov 104  }
   0x7   :  { %v50_v11 = vld [vmem:[%s3145_s0 + $0x50] sm:$0xff]  ;;  %v52_v13 = vld [vmem:[%s3145_s0 + $0x60] sm:$0xff]  ;;  %v57_v14 = vld [vmem:[%s3145_s0 + $0x88] sm:$0xff]  ;;  %s2063_s18 = smov 88   ;;  %s2064_s19 = smov 84  }
   0x8   :  { %v56_v15 = vld [vmem:[%s3145_s0 + $0x80] sm:$0xff]  ;;  %v59_v16 = vld [vmem:[%s3145_s0 + $0x98] sm:$0xff]  ;;  %v58_v17 = vld [vmem:[%s3145_s0 + $0x90] sm:$0xff]  ;;  %s2065_s20 = smov 108   ;;  %s2066_s21 = smov 52  }
   0x9   :  { %v53_v18 = vld [vmem:[%s3145_s0 + $0x68] sm:$0xff]  ;;  %v55_v19 = vld [vmem:[%s3145_s0 + $0x78] sm:$0xff]  ;;  %v54_v20 = vld [vmem:[%s3145_s0 + $0x70] sm:$0xff] }
   0xa   :  { %78 = vperm.xlu2 %1966, %v45_v4   ;;  %v178_v21 = vld [vmem:[%s3146_s1 + $0x18] sm:$0x1]  ;;  %v1906_v25 = vld [vmem:[%s3146_s1 + $0x10] sm:$0xff]  ;;  %v1905_v26 = vld [vmem:[%s3146_s1 + $0x8] sm:$0xff] }
   0xb   :  { %72 = vperm.xlu1 %1965, %v43_v5   ;;  %66 = vperm.xlu0 %1964, %v41_v6   ;;  %v192_v22 = vunpack.c.l.b16 %v178_v21  ;;  %v1904_v27 = vld [vmem:[%s3146_s1] sm:$0xff] }
   0xd   :  { %v196_v23 = vpack.c.b16 %v192_v22, %v192_v22 }
   0xf   :  { %v233_v24 = vsel %vm231_vm0, %v196_v23, 0 }
  0x10   :  { %239 = vmatpush.bf16.msra.mxu0 %v233_v24  ;;  %1917 = vmatpush.bf16.msra.mxu3 %v233_v24 }
  0x12   :  { %87 = vperm.xlu2 %1966, %v48_v7  }
  0x13   :  { %84 = vperm.xlu1 %1965, %v47_v8   ;;  %81 = vperm.xlu0 %1964, %v46_v9  }
  0x14   :  { %240 = vmatpush.bf16.msra.mxu0 %v1906_v25  ;;  %1918 = vmatpush.bf16.msra.mxu3 %v1906_v25 }
  0x18   :  { %241 = vmatpush.bf16.msra.mxu0 %v1905_v26  ;;  %1919 = vmatpush.bf16.msra.mxu3 %v1905_v26 }
  0x1a   :  { %96 = vperm.xlu2 %1966, %v51_v10  }
  0x1b   :  { %93 = vperm.xlu1 %1965, %v50_v11   ;;  %90 = vperm.xlu0 %1964, %v49_v12   ;;  %v1838_v12 = vld [vmem:[%s3147_s2] sm:$0xf] }
  0x1c   :  { %242 = vmatpush.bf16.msra.mxu0 %v1904_v27  ;;  %1920 = vmatpush.bf16.msra.mxu3 %v1904_v27 }
  0x22   :  { %99 = vperm.xlu2 %1966, %v52_v13   ;;  %v1908_v13 = vld [vmem:[%s3147_s2 + $0x4] sm:$0xf0] }
  0x23   :  { %114 = vperm.xlu1 %1965, %v57_v14   ;;  %111 = vperm.xlu0 %1964, %v56_v15   ;;  %v1907_v14 = vld [vmem:[%s3147_s2 + $0x4] sm:$0xf]  ;;  %v1839_v15 = vor.u32 %v1908_v13, %v1838_v12 }
  0x25   :  { %354 = vmatpush.bf16.msra.mxu1 %v1839_v15  ;;  %1921 = vmatpush.bf16.msrb.mxu3 %v1839_v15 }
  0x2a   :  { %120 = vperm.xlu2 %1966, %v59_v16   ;;  %v1840_v16 = vld [vmem:[%s3147_s2 + $0x8] sm:$0xf0]  ;;  %s2058_s2 = smov 124  }
  0x2b   :  { %117 = vperm.xlu1 %1965, %v58_v17   ;;  %102 = vperm.xlu0 %1964, %v53_v18   ;;  %v1843_v17 = vor.u32 %v1907_v14, %v1840_v16 }
  0x2d   :  { %413 = vmatpush.bf16.msra.mxu2 %v1843_v17 }
  0x33   :  { %108 = vperm.xlu1 %1965, %v55_v19   ;;  %105 = vperm.xlu0 %1964, %v54_v20  }
  0x5c   :  { %v76_v28 = vpop.permute.xlu2 %75 }
  0x5d   :  { %vm126_vm8 = vcmp.eq.s32.totalorder %v2205_v32, %v76_v28 }
  0x5e   :  { %v146_v55 = vsel %vm126_vm8, 1.0, %v2057_v36  ;;  %vm466_vm8 = vcmask 228352  }
  0x64   :  { %v79_v33 = vpop.permute.xlu2 %78 }
  0x65   :  { %vm127_vm9 = vcmp.eq.s32.totalorder %v2205_v32, %v79_v33 }
  0x66   :  { %v147_v56 = vsel %vm127_vm9, 1.0, %v2057_v36  ;;  %vm1149_vm9 = vcmask 916480  }
  0x67   :  { %v164_v58 = vpack.c.bf16 %v147_v56, %v146_v55 }
  0x6c   :  { %v88_v40 = vpop.permute.xlu2 %87 }
  0x6d   :  { %vm130_vm15 = vcmp.eq.s32.totalorder %v2205_v32, %v88_v40 }
  0x6e   :  { %v150_v3 = vsel %vm130_vm15, 1.0, %v2057_v36  ;;  %vm1462_vm15 = vcmask 1043456  }
  0x74   :  { %v97_v43 = vpop.permute.xlu2 %96 }
  0x75   :  { %v70_v30 = vpop.permute.xlu1 %69  ;;  %v64_v31 = vpop.permute.xlu0 %63 }
  0x76   :  { %vm122_vm1 = vcmp.eq.s32.totalorder %v2205_v32, %v64_v31  ;;  %vm124_vm5 = vcmp.eq.s32.totalorder %v2205_v32, %v70_v30 }
  0x77   :  { %v142_v37 = vsel %vm122_vm1, 1.0, %v2057_v36  ;;  %v144_v47 = vsel %vm124_vm5, 1.0, %v2057_v36  ;;  %vm133_vm1 = vcmp.eq.s32.totalorder %v2205_v32, %v97_v43 }
  0x78   :  { %v153_v6 = vsel %vm133_vm1, 1.0, %v2057_v36  ;;  %vm1414_vm1 = vcmask 64512  }
  0x7c   :  { %v100_v51 = vpop.permute.xlu2 %99 }
  0x7d   :  { %v73_v34 = vpop.permute.xlu1 %72  ;;  %v67_v35 = vpop.permute.xlu0 %66 }
  0x7e   :  { %vm123_vm2 = vcmp.eq.s32.totalorder %v2205_v32, %v67_v35  ;;  %vm125_vm4 = vcmp.eq.s32.totalorder %v2205_v32, %v73_v34 }
  0x7f   :  { %v143_v38 = vsel %vm123_vm2, 1.0, %v2057_v36  ;;  %v145_v44 = vsel %vm125_vm4, 1.0, %v2057_v36  ;;  %vm134_vm4 = vcmp.eq.s32.totalorder %v2205_v32, %v100_v51 }
  0x80   :  { %v162_v39 = vpack.c.bf16 %v143_v38, %v142_v37  ;;  %v163_v48 = vpack.c.bf16 %v145_v44, %v144_v47  ;;  %v154_v10 = vsel %vm134_vm4, 1.0, %v2057_v36  ;;  %vm1419_vm4 = vcmask 195584  }
  0x82   :  { %1826 = vmatmul.msk.bf16.vlgmr.msra.gmra.mxu0 %vm200_vm3, %v162_v39 }
  0x84   :  { %v121_v59 = vpop.permute.xlu2 %120 }
  0x85   :  { %v85_v41 = vpop.permute.xlu1 %84  ;;  %v82_v42 = vpop.permute.xlu0 %81  ;;  %vm141_vm11 = vcmp.eq.s32.totalorder %v2205_v32, %v121_v59 }
  0x86   :  { %v161_v61 = vsel %vm141_vm11, 1.0, %v2057_v36  ;;  %vm129_vm12 = vcmp.eq.s32.totalorder %v2205_v32, %v85_v41  ;;  %vm128_vm13 = vcmp.eq.s32.totalorder %v2205_v32, %v82_v42  ;;  %vm870_vm11 = vcmask 162912  }
  0x87   :  { %v149_v63 = vsel %vm129_vm12, 1.0, %v2057_v36  ;;  %v148_v0 = vsel %vm128_vm13, 1.0, %v2057_v36  ;;  %vm986_vm12 = vcmask 359712   ;;  %vm1086_vm13 = vcmask 622112  }
  0x88   :  { %v165_v1 = vpack.c.bf16 %v149_v63, %v148_v0 }
  0x8d   :  { %v94_v45 = vpop.permute.xlu1 %93  ;;  %v91_v46 = vpop.permute.xlu0 %90 }
  0x8e   :  { %vm131_vm14 = vcmp.eq.s32.totalorder %v2205_v32, %v91_v46  ;;  %vm132_vm0 = vcmp.eq.s32.totalorder %v2205_v32, %v94_v45 }
  0x8f   :  { %v151_v2 = vsel %vm131_vm14, 1.0, %v2057_v36  ;;  %v152_v5 = vsel %vm132_vm0, 1.0, %v2057_v36  ;;  %vm1361_vm14 = vcmask 950112   ;;  %vm526_vm0 = vcmask 31744  }
  0x90   :  { %v166_v4 = vpack.c.bf16 %v151_v2, %v150_v3  ;;  %v167_v7 = vpack.c.bf16 %v153_v6, %v152_v5 }
  0x92   :  { %1827 = vmatmul.msk.bf16.gmra.mxu0 %vm200_vm3, %v163_v48 }
  0x95   :  { %v115_v49 = vpop.permute.xlu1 %114  ;;  %v112_v50 = vpop.permute.xlu0 %111 }
  0x96   :  { %vm139_vm6 = vcmp.eq.s32.totalorder %v2205_v32, %v115_v49  ;;  %vm138_vm7 = vcmp.eq.s32.totalorder %v2205_v32, %v112_v50 }
  0x97   :  { %v159_v52 = vsel %vm139_vm6, 1.0, %v2057_v36  ;;  %v158_v53 = vsel %vm138_vm7, 1.0, %v2057_v36  ;;  %vm316_vm7 = vcmask 130048  }
  0x98   :  { %v170_v54 = vpack.c.bf16 %v159_v52, %v158_v53 }
  0x9a   :  { %1834 = vmatmul.msk.bf16.vlgmr.msra.gmra.mxu3 %vm200_vm3, %v170_v54 }
  0x9b   :  { %1922 = vmatpush.bf16.msra.mxu3 %v1843_v17 }
  0x9d   :  { %v118_v57 = vpop.permute.xlu1 %117  ;;  %v103_v8 = vpop.permute.xlu0 %102 }
  0x9e   :  { %vm140_vm10 = vcmp.eq.s32.totalorder %v2205_v32, %v118_v57  ;;  %vm135_vm2 = vcmp.eq.s32.totalorder %v2205_v32, %v103_v8 }
  0x9f   :  { %v160_v60 = vsel %vm140_vm10, 1.0, %v2057_v36  ;;  %v155_v9 = vsel %vm135_vm2, 1.0, %v2057_v36  ;;  %vm674_vm10 = vcmask 64544   ;;  %vm1422_vm2 = vcmask 261120  }
  0xa0   :  { %v171_v62 = vpack.c.bf16 %v161_v61, %v160_v60  ;;  %v168_v11 = vpack.c.bf16 %v155_v9, %v154_v10 }
  0xa2   :  { %1828 = vmatmul.msk.bf16.gmra.mxu0 %vm200_vm3, %v164_v58 }
  0xa5   :  { %v109_v18 = vpop.permute.xlu1 %108  ;;  %v106_v19 = vpop.permute.xlu0 %105 }
  0xa6   :  { %vm137_vm5 = vcmp.eq.s32.totalorder %v2205_v32, %v109_v18  ;;  %vm136_vm6 = vcmp.eq.s32.totalorder %v2205_v32, %v106_v19 }
  0xa7   :  { %v157_v20 = vsel %vm137_vm5, 1.0, %v2057_v36  ;;  %v156_v21 = vsel %vm136_vm6, 1.0, %v2057_v36  ;;  %vm1458_vm5 = vcmask 326656  }
  0xa8   :  { %v169_v22 = vpack.c.bf16 %v157_v20, %v156_v21 }
  0xaa   :  { %1835 = vmatmul.msk.bf16.gmra.mxu3 %vm200_vm3, %v171_v62 }
  0xb2   :  { %1829 = vmatmul.msk.bf16.gmra.mxu0 %vm200_vm3, %v165_v1 }
  0xc2   :  { %1830 = vmatmul.msk.bf16.gmra.mxu0 %vm200_vm3, %v166_v4 }
  0xd2   :  { %1831 = vmatmul.msk.bf16.gmra.mxu0 %vm200_vm3, %v167_v7 }
  0xe2   :  { %1832 = vmatmul.msk.bf16.gmra.mxu0 %vm200_vm3, %v168_v11 }
  0xf2   :  { %1833 = vmatmul.msk.bf16.gmra.mxu0 %vm200_vm3, %v169_v22 }
  0xff   :  { %v244_v23 = vpop.f32.mrf.mxu0 }
 0x107   :  { %v246_v24 = vpop.f32.mrf.mxu0 }
 0x108   :  { %v294_v25 = vpack.c.bf16 %v246_v24, %v244_v23 }
 0x10a   :  { %1844 = vmatmul.msk.bf16.vlgmr.msra.gmra.mxu1 %vm316_vm7, %v294_v25  ;;  %1854 = vmatmul.msk.bf16.vlgmr.msra.gmra.mxu2 %vm316_vm7, %v294_v25 }
 0x10f   :  { %v249_v26 = vpop.f32.mrf.mxu0 }
 0x117   :  { %v251_v27 = vpop.f32.mrf.mxu0 }
 0x118   :  { %v295_v28 = vpack.c.bf16 %v251_v27, %v249_v26 }
 0x11a   :  { %1845 = vmatmul.msk.bf16.gmra.mxu1 %vm316_vm7, %v295_v28  ;;  %1855 = vmatmul.msk.bf16.gmra.mxu2 %vm316_vm7, %v295_v28 }
 0x11d   :  { %v284_v29 = vpop.f32.mrf.mxu3 }
 0x11f   :  { %v254_v30 = vpop.f32.mrf.mxu0 }
 0x125   :  { %v286_v31 = vpop.f32.mrf.mxu3 }
 0x126   :  { %v302_v32 = vpack.c.bf16 %v286_v31, %v284_v29 }
 0x127   :  { %v256_v33 = vpop.f32.mrf.mxu0 }
 0x128   :  { %v296_v34 = vpack.c.bf16 %v256_v33, %v254_v30 }
 0x12a   :  { %1846 = vmatmul.msk.bf16.gmra.mxu1 %vm316_vm7, %v296_v34  ;;  %1856 = vmatmul.msk.bf16.gmra.mxu2 %vm316_vm7, %v296_v34 }
 0x12d   :  { %v289_v35 = vpop.f32.mrf.mxu3 }
 0x12f   :  { %v259_v36 = vpop.f32.mrf.mxu0 }
 0x135   :  { %v291_v37 = vpop.f32.mrf.mxu3 }
 0x136   :  { %v303_v38 = vpack.c.bf16 %v291_v37, %v289_v35 }
 0x137   :  { %v261_v39 = vpop.f32.mrf.mxu0 }
 0x138   :  { %v297_v40 = vpack.c.bf16 %v261_v39, %v259_v36  ;;  %1853 = vmatmul.msk.bf16.vlgmr.msrb.gmra.mxu3 %vm316_vm7, %v303_v38 }
 0x13a   :  { %1847 = vmatmul.msk.bf16.gmra.mxu1 %vm316_vm7, %v297_v40  ;;  %1857 = vmatmul.msk.bf16.gmra.mxu2 %vm316_vm7, %v297_v40 }
 0x13f   :  { %v264_v41 = vpop.f32.mrf.mxu0 }
 0x147   :  { %v266_v42 = vpop.f32.mrf.mxu0 }
 0x148   :  { %v298_v43 = vpack.c.bf16 %v266_v42, %v264_v41  ;;  %1863 = vmatmul.msk.bf16.vlgmr.msra.gmra.mxu3 %vm316_vm7, %v303_v38 }
 0x14a   :  { %1848 = vmatmul.msk.bf16.gmra.mxu1 %vm316_vm7, %v298_v43  ;;  %1858 = vmatmul.msk.bf16.gmra.mxu2 %vm316_vm7, %v298_v43 }
 0x14f   :  { %v269_v44 = vpop.f32.mrf.mxu0 }
 0x157   :  { %v271_v45 = vpop.f32.mrf.mxu0 }
 0x158   :  { %v299_v46 = vpack.c.bf16 %v271_v45, %v269_v44 }
 0x15a   :  { %1849 = vmatmul.msk.bf16.gmra.mxu1 %vm316_vm7, %v299_v46  ;;  %1859 = vmatmul.msk.bf16.gmra.mxu2 %vm316_vm7, %v299_v46 }
 0x15f   :  { %v274_v47 = vpop.f32.mrf.mxu0 }
 0x167   :  { %v276_v48 = vpop.f32.mrf.mxu0 }
 0x168   :  { %v300_v49 = vpack.c.bf16 %v276_v48, %v274_v47 }
 0x16a   :  { %1850 = vmatmul.msk.bf16.gmra.mxu1 %vm316_vm7, %v300_v49  ;;  %1860 = vmatmul.msk.bf16.gmra.mxu2 %vm316_vm7, %v300_v49 }
 0x16f   :  { %v279_v50 = vpop.f32.mrf.mxu0 }
 0x177   :  { %v281_v51 = vpop.f32.mrf.mxu0 }
 0x178   :  { %v301_v52 = vpack.c.bf16 %v281_v51, %v279_v50 }
 0x17a   :  { %1851 = vmatmul.msk.bf16.gmra.mxu1 %vm316_vm7, %v301_v52  ;;  %1861 = vmatmul.msk.bf16.gmra.mxu2 %vm316_vm7, %v301_v52 }
 0x187   :  { %v2287_v53 = vpop.f32.mrf.mxu1 }
 0x188   :  { %465 = vst [vmem:[#allocation2] sm:$0xff] %v2287_v53 }
 0x18a   :  { %1852 = vmatmul.msk.bf16.gmra.mxu1 %vm316_vm7, %v302_v32  ;;  %1862 = vmatmul.msk.bf16.gmra.mxu2 %vm316_vm7, %v302_v32 }
 0x18d   :  { %v415_v54 = vpop.f32.mrf.mxu2 }
 0x18f   :  { %v2292_v55 = vpop.f32.mrf.mxu1 }
 0x190   :  { %468 = vst [vmem:[#allocation2 + $0x10] sm:$0xff] %v2292_v55 }
 0x195   :  { %v417_v56 = vpop.f32.mrf.mxu2 }
 0x197   :  { %v2295_v57 = vpop.f32.mrf.mxu1 }
 0x198   :  { %470 = vst [vmem:[#allocation2 + $0x20] sm:$0xff] %v2295_v57  ;;  %602 = vrot.lane.b32.xlu1 %v2295_v57, %s2058_s2  ;;  %709 = vrot.lane.b32.xlu2 %v2295_v57, %s2059_s14 }
 0x19d   :  { %v420_v58 = vpop.f32.mrf.mxu2 }
 0x19f   :  { %v2302_v59 = vpop.f32.mrf.mxu1 }
 0x1a0   :  { %472 = vst [vmem:[#allocation2 + $0x30] sm:$0xff] %v2302_v59  ;;  %604 = vrot.lane.b32.xlu2 %v2302_v59, %s2058_s2  ;;  %711 = vrot.lane.b32.xlu0 %v2302_v59, %s2059_s14 }
 0x1a5   :  { %v422_v60 = vpop.f32.mrf.mxu2 }
 0x1a7   :  { %v2309_v61 = vpop.f32.mrf.mxu1 }
 0x1a8   :  { %474 = vst [vmem:[#allocation2 + $0x40] sm:$0xff] %v2309_v61  ;;  %806 = vrot.lane.b32.xlu1 %v2309_v61, %s2060_s15 }
 0x1ad   :  { %v425_v62 = vpop.f32.mrf.mxu2 }
 0x1ae   :  { %475 = vst.msk [vmem:[#allocation2 + $0x48] sm:$0xff] %vm466_vm8, %v425_v62 }
 0x1af   :  { %v2315_v63 = vpop.f32.mrf.mxu1 }
 0x1b0   :  { %476 = vst [vmem:[#allocation2 + $0x50] sm:$0xff] %v2315_v63 }
 0x1b5   :  { %v427_v0 = vpop.f32.mrf.mxu2  ;;  %v1109_v9 = vld [vmem:[#allocation2 + $0x48] sm:$0xff] }
 0x1b6   :  { %477 = vst.msk [vmem:[#allocation2 + $0x58] sm:$0xff] %vm466_vm8, %v427_v0 }
 0x1b7   :  { %v2319_v1 = vpop.f32.mrf.mxu1 }
 0x1b8   :  { %478 = vst [vmem:[#allocation2 + $0x60] sm:$0xff] %v2319_v1 }
 0x1bb   :  { %v2322_v2 = vpop.f32.mrf.mxu3 }
 0x1bc   :  { %502 = vst [vmem:[#allocation2 + $0x120] sm:$0xff] %v2322_v2  ;;  %1058 = vrot.lane.b32.xlu2 %v2322_v2, %s2061_s16  ;;  %834 = vrot.lane.b32.xlu0 %v2322_v2, %s2060_s15 }
 0x1bd   :  { %v430_v3 = vpop.f32.mrf.mxu2  ;;  %v1110_v18 = vld [vmem:[#allocation2 + $0x58] sm:$0xff] }
 0x1be   :  { %479 = vst.msk [vmem:[#allocation2 + $0x68] sm:$0xff] %vm466_vm8, %v430_v3 }
 0x1bf   :  { %v2330_v4 = vpop.f32.mrf.mxu1 }
 0x1c0   :  { %480 = vst [vmem:[#allocation2 + $0x70] sm:$0xff] %v2330_v4 }
 0x1c3   :  { %v2333_v5 = vpop.f32.mrf.mxu3 }
 0x1c4   :  { %504 = vst [vmem:[#allocation2 + $0x130] sm:$0xff] %v2333_v5  ;;  %606 = vrot.lane.b32.xlu2 %v2309_v61, %s2058_s2  ;;  %954 = vrot.lane.b32.xlu0 %v2322_v2, %s2062_s17 }
 0x1c5   :  { %v432_v6 = vpop.f32.mrf.mxu2  ;;  %836 = vrot.lane.b32.xlu1 %v2333_v5, %s2060_s15  ;;  %v1111_v21 = vld [vmem:[#allocation2 + $0x68] sm:$0xff] }
 0x1c6   :  { %481 = vst.msk [vmem:[#allocation2 + $0x78] sm:$0xff] %vm466_vm8, %v432_v6 }
 0x1c7   :  { %v2343_v7 = vpop.f32.mrf.mxu1 }
 0x1c8   :  { %482 = vst [vmem:[#allocation2 + $0x80] sm:$0xff] %v2343_v7 }
 0x1cb   :  { %v460_v8 = vpop.f32.mrf.mxu3 }
 0x1cc   :  { %503 = vst.msk [vmem:[#allocation2 + $0x128] sm:$0xff] %vm466_vm8, %v460_v8  ;;  %1129 = vrot.lane.b32.xlu2 %v1109_v9, %s2060_s15  ;;  %713 = vrot.lane.b32.xlu0 %v2309_v61, %s2059_s14 }
 0x1cd   :  { %v435_v10 = vpop.f32.mrf.mxu2  ;;  %956 = vrot.lane.b32.xlu1 %v2333_v5, %s2062_s17  ;;  %v1112_v24 = vld [vmem:[#allocation2 + $0x78] sm:$0xff] }
 0x1ce   :  { %483 = vst.msk [vmem:[#allocation2 + $0x88] sm:$0xff] %vm466_vm8, %v435_v10 }
 0x1cf   :  { %v2353_v11 = vpop.f32.mrf.mxu1 }
 0x1d0   :  { %484 = vst [vmem:[#allocation2 + $0x90] sm:$0xff] %v2353_v11 }
 0x1d3   :  { %v462_v12 = vpop.f32.mrf.mxu3  ;;  %v1309_v15 = vld [vmem:[#allocation2 + $0x128] sm:$0xff] }
 0x1d4   :  { %505 = vst.msk [vmem:[#allocation2 + $0x138] sm:$0xff] %vm466_vm8, %v462_v12  ;;  %808 = vrot.lane.b32.xlu2 %v2315_v63, %s2060_s15  ;;  %1060 = vrot.lane.b32.xlu0 %v2333_v5, %s2061_s16 }
 0x1d5   :  { %v437_v13 = vpop.f32.mrf.mxu2  ;;  %715 = vrot.lane.b32.xlu1 %v2315_v63, %s2059_s14  ;;  %v1182_v33 = vld [vmem:[#allocation2 + $0x88] sm:$0xff] }
 0x1d6   :  { %485 = vst.msk [vmem:[#allocation2 + $0x98] sm:$0xff] %vm466_vm8, %v437_v13 }
 0x1d7   :  { %v2364_v14 = vpop.f32.mrf.mxu1 }
 0x1d8   :  { %486 = vst [vmem:[#allocation2 + $0xa0] sm:$0xff] %v2364_v14 }
 0x1db   :  { %v1310_v27 = vld [vmem:[#allocation2 + $0x138] sm:$0xff] }
 0x1dc   :  { %608 = vrot.lane.b32.xlu0 %v2315_v63, %s2058_s2  ;;  %1337 = vrot.lane.b32.xlu2 %v1309_v15, %s2063_s18 }
 0x1dd   :  { %v440_v16 = vpop.f32.mrf.mxu2  ;;  %717 = vrot.lane.b32.xlu1 %v2319_v1, %s2059_s14  ;;  %v1183_v43 = vld [vmem:[#allocation2 + $0x98] sm:$0xff] }
 0x1de   :  { %487 = vst.msk [vmem:[#allocation2 + $0xa8] sm:$0xff] %vm466_vm8, %v440_v16 }
 0x1df   :  { %v2373_v17 = vpop.f32.mrf.mxu1 }
 0x1e0   :  { %488 = vst [vmem:[#allocation2 + $0xb0] sm:$0xff] %v2373_v17 }
 0x1e4   :  { %1131 = vrot.lane.b32.xlu0 %v1110_v18, %s2060_s15  ;;  %719 = vrot.lane.b32.xlu2 %v2330_v4, %s2059_s14 }
 0x1e5   :  { %v442_v19 = vpop.f32.mrf.mxu2  ;;  %810 = vrot.lane.b32.xlu1 %v2319_v1, %s2060_s15  ;;  %v1242_v54 = vld [vmem:[#allocation2 + $0xa8] sm:$0xff] }
 0x1e6   :  { %489 = vst.msk [vmem:[#allocation2 + $0xb8] sm:$0xff] %vm466_vm8, %v442_v19 }
 0x1e7   :  { %v2382_v20 = vpop.f32.mrf.mxu1 }
 0x1e8   :  { %490 = vst [vmem:[#allocation2 + $0xc0] sm:$0xff] %v2382_v20 }
 0x1ec   :  { %930 = vrot.lane.b32.xlu0 %v2319_v1, %s2062_s17  ;;  %812 = vrot.lane.b32.xlu2 %v2330_v4, %s2060_s15 }
 0x1ed   :  { %v445_v22 = vpop.f32.mrf.mxu2  ;;  %1133 = vrot.lane.b32.xlu1 %v1111_v21, %s2060_s15  ;;  %v1116_v13 = vld [vmem:[#allocation2 + $0xb8] sm:$0xff] }
 0x1ee   :  { %491 = vst.msk [vmem:[#allocation2 + $0xc8] sm:$0xff] %vm466_vm8, %v445_v22 }
 0x1ef   :  { %v2391_v23 = vpop.f32.mrf.mxu1 }
 0x1f0   :  { %492 = vst [vmem:[#allocation2 + $0xd0] sm:$0xff] %v2391_v23 }
 0x1f2   :  { %v710_v30 = vpop.permute.xlu2 %709 }
 0x1f3   :  { %v757_v40 = vadd.f32 %v710_v30, %v2287_v53 }
 0x1f4   :  { %610 = vrot.lane.b32.xlu0 %v2319_v1, %s2058_s2  ;;  %1135 = vrot.lane.b32.xlu2 %v1112_v24, %s2060_s15 }
 0x1f5   :  { %v447_v25 = vpop.f32.mrf.mxu2  ;;  %1200 = vrot.lane.b32.xlu1 %v1111_v21, %s2062_s17 }
 0x1f6   :  { %493 = vst.msk [vmem:[#allocation2 + $0xd8] sm:$0xff] %vm466_vm8, %v447_v25 }
 0x1f7   :  { %v2399_v26 = vpop.f32.mrf.mxu1 }
 0x1f8   :  { %494 = vst [vmem:[#allocation2 + $0xe0] sm:$0xff] %v2399_v26 }
 0x1fa   :  { %v2425_v35 = vpop.permute.xlu2 %604 }
 0x1fc   :  { %1202 = vrot.lane.b32.xlu2 %v1112_v24, %s2062_s17  ;;  %1339 = vrot.lane.b32.xlu0 %v1310_v27, %s2063_s18 }
 0x1fd   :  { %v450_v28 = vpop.f32.mrf.mxu2  ;;  %932 = vrot.lane.b32.xlu1 %v2330_v4, %s2062_s17 }
 0x1fe   :  { %495 = vst.msk [vmem:[#allocation2 + $0xe8] sm:$0xff] %vm466_vm8, %v450_v28 }
 0x1ff   :  { %v2407_v29 = vpop.f32.mrf.mxu1 }
 0x200   :  { %496 = vst [vmem:[#allocation2 + $0xf0] sm:$0xff] %v2407_v29 }
 0x204   :  { %721 = vrot.lane.b32.xlu2 %v2343_v7, %s2059_s14  ;;  %814 = vrot.lane.b32.xlu0 %v2343_v7, %s2060_s15 }
 0x205   :  { %v452_v31 = vpop.f32.mrf.mxu2  ;;  %612 = vrot.lane.b32.xlu1 %v2330_v4, %s2058_s2 }
 0x206   :  { %497 = vst.msk [vmem:[#allocation2 + $0xf8] sm:$0xff] %vm466_vm8, %v452_v31 }
 0x207   :  { %v2417_v32 = vpop.f32.mrf.mxu1 }
 0x208   :  { %498 = vst [vmem:[#allocation2 + $0x100] sm:$0xff] %v2417_v32 }
 0x20a   :  { %v2431_v37 = vpop.permute.xlu1 %602 }
 0x20c   :  { %1204 = vrot.lane.b32.xlu2 %v1182_v33, %s2062_s17  ;;  %934 = vrot.lane.b32.xlu0 %v2343_v7, %s2062_s17 }
 0x20d   :  { %v455_v34 = vpop.f32.mrf.mxu2  ;;  %1038 = vrot.lane.b32.xlu1 %v2343_v7, %s2061_s16 }
 0x20e   :  { %499 = vst.msk [vmem:[#allocation2 + $0x108] sm:$0xff] %vm466_vm8, %v455_v34 }
 0x20f   :  { %v2428_v36 = vpop.f32.mrf.mxu1 }
 0x210   :  { %500 = vst [vmem:[#allocation2 + $0x110] sm:$0xff] %v2428_v36 }
 0x212   :  { %v712_v45 = vpop.permute.xlu0 %711 }
 0x213   :  { %v758_v49 = vadd.f32 %v712_v45, %v2292_v55 }
 0x214   :  { %1260 = vrot.lane.b32.xlu2 %v1182_v33, %s2061_s16  ;;  %723 = vrot.lane.b32.xlu0 %v2353_v11, %s2059_s14 }
 0x215   :  { %v457_v38 = vpop.f32.mrf.mxu2  ;;  %614 = vrot.lane.b32.xlu1 %v2343_v7, %s2058_s2 }
 0x216   :  { %501 = vst.msk [vmem:[#allocation2 + $0x118] sm:$0xff] %vm466_vm8, %v457_v38  ;;  %v2439_v39 = vpop.permute.xlu2 %1058 }
 0x21a   :  { %v807_v41 = vpop.permute.xlu1 %806 }
 0x21b   :  { %v2442_v42 = vadd.f32 %v807_v41, %v757_v40 }
 0x21c   :  { %1040 = vrot.lane.b32.xlu2 %v2353_v11, %s2061_s16  ;;  %1206 = vrot.lane.b32.xlu0 %v1183_v43, %s2062_s17 }
 0x21d   :  { %1137 = vrot.lane.b32.xlu1 %v1182_v33, %s2060_s15  ;;  %v1186_v33 = vld [vmem:[#allocation2 + $0xc8] sm:$0xff] }
 0x21e   :  { %v2448_v44 = vpop.permute.xlu2 %606 }
 0x224   :  { %1139 = vrot.lane.b32.xlu2 %v1183_v43, %s2060_s15  ;;  %1262 = vrot.lane.b32.xlu0 %v1183_v43, %s2061_s16 }
 0x225   :  { %816 = vrot.lane.b32.xlu1 %v2353_v11, %s2060_s15 }
 0x226   :  { %v1130_v46 = vpop.permute.xlu2 %1129 }
 0x227   :  { %v1150_v47 = vsel %vm1149_vm9, %v807_v41, %v1130_v46  ;;  %v656_v46 = vadd.f32 %v2431_v37, %v2287_v53  ;;  %v1187_v37 = vld [vmem:[#allocation2 + $0xd8] sm:$0xff] }
 0x228   :  { %v2455_v48 = vadd.f32 %v1150_v47, %v757_v40 }
 0x22c   :  { %938 = vrot.lane.b32.xlu2 %v2364_v14, %s2062_s17  ;;  %725 = vrot.lane.b32.xlu0 %v2364_v14, %s2059_s14 }
 0x22d   :  { %936 = vrot.lane.b32.xlu1 %v2353_v11, %s2062_s17 }
 0x22e   :  { %v809_v50 = vpop.permute.xlu2 %808  ;;  %v2464_v51 = vpop.permute.xlu0 %834 }
 0x22f   :  { %v2466_v52 = vadd.f32 %v809_v50, %v758_v49 }
 0x234   :  { %1264 = vrot.lane.b32.xlu2 %v1242_v54, %s2061_s16  ;;  %818 = vrot.lane.b32.xlu0 %v2364_v14, %s2060_s15 }
 0x235   :  { %727 = vrot.lane.b32.xlu1 %v2373_v17, %s2059_s14 }
 0x236   :  { %v2473_v56 = vpop.permute.xlu2 %1337  ;;  %v2475_v58 = vpop.permute.xlu0 %954 }
 0x237   :  { %v2477_v60 = vpop.permute.xlu1 %836 }
 0x238   :  { %3163 = vst [vmem:[#allocation8_spill] sm:$0xff] %v2477_v60 }
 0x23c   :  { %1321 = vrot.lane.b32.xlu2 %v1242_v54, %s2063_s18  ;;  %1042 = vrot.lane.b32.xlu0 %v2364_v14, %s2061_s16 }
 0x23d   :  { %820 = vrot.lane.b32.xlu1 %v2373_v17, %s2060_s15 }
 0x23e   :  { %v2484_v62 = vpop.permute.xlu2 %719  ;;  %v714_v0 = vpop.permute.xlu0 %713 }
 0x23f   :  { %v2486_v3 = vpop.permute.xlu1 %956 }
 0x244   :  { %1141 = vrot.lane.b32.xlu0 %v1242_v54, %s2060_s15  ;;  %729 = vrot.lane.b32.xlu2 %v2382_v20, %s2059_s14 }
 0x245   :  { %1044 = vrot.lane.b32.xlu1 %v2373_v17, %s2061_s16 }
 0x246   :  { %v813_v6 = vpop.permute.xlu2 %812  ;;  %v2493_v8 = vpop.permute.xlu0 %1060 }
 0x247   :  { %3164 = vst [vmem:[#allocation9_spill] sm:$0xff] %v2493_v8  ;;  %v716_v9 = vpop.permute.xlu1 %715  ;;  %v1249_v8 = vld [vmem:[#allocation2 + $0x118] sm:$0xff] }
 0x248   :  { %v760_v10 = vadd.f32 %v716_v9, %v2302_v59  ;;  %v759_v59 = vadd.f32 %v714_v0, %v2295_v57  ;;  %v2536_v9 = vsel %vm674_vm10, %v656_v46, -inf }
 0x249   :  { %3166 = vst [vmem:[#allocation11_spill] sm:$0xff] %v2536_v9 }
 0x24a   :  { %v2496_v12 = vadd.f32 %v813_v6, %v760_v10 }
 0x24c   :  { %1208 = vrot.lane.b32.xlu0 %v1242_v54, %s2062_s17  ;;  %822 = vrot.lane.b32.xlu2 %v2382_v20, %s2060_s15 }
 0x24d   :  { %1143 = vrot.lane.b32.xlu1 %v1116_v13, %s2060_s15 }
 0x24e   :  { %v1136_v15 = vpop.permute.xlu2 %1135  ;;  %v2502_v16 = vpop.permute.xlu0 %608 }
 0x24f   :  { %3165 = vst [vmem:[#allocation10_spill] sm:$0xff] %v2502_v16  ;;  %v718_v18 = vpop.permute.xlu1 %717  ;;  %v1153_v19 = vsel %vm1149_vm9, %v813_v6, %v1136_v15 }
 0x250   :  { %v2505_v21 = vadd.f32 %v1153_v19, %v760_v10 }
 0x254   :  { %940 = vrot.lane.b32.xlu0 %v2373_v17, %s2062_s17  ;;  %942 = vrot.lane.b32.xlu2 %v2382_v20, %s2062_s17 }
 0x255   :  { %1210 = vrot.lane.b32.xlu1 %v1116_v13, %s2062_s17 }
 0x256   :  { %v1203_v22 = vpop.permute.xlu2 %1202  ;;  %v1132_v24 = vpop.permute.xlu0 %1131 }
 0x257   :  { %v811_v25 = vpop.permute.xlu1 %810  ;;  %v1151_v27 = vsel %vm1149_vm9, %v809_v50, %v1132_v24  ;;  %v657_v24 = vadd.f32 %v2425_v35, %v2292_v55 }
 0x258   :  { %v2514_v28 = vadd.f32 %v811_v25, %v759_v59  ;;  %v1171_v30 = vadd.f32 %v1151_v27, %v758_v49 }
 0x25a   :  { %v2516_v31 = vadd.f32 %v1203_v22, %v1171_v30  ;;  %v761_v22 = vadd.f32 %v718_v18, %v2309_v61  ;;  %v2572_v18 = vsel %vm674_vm10, %v657_v24, -inf }
 0x25b   :  { %3169 = vst [vmem:[#allocation14_spill] sm:$0xff] %v2572_v18 }
 0x25c   :  { %1266 = vrot.lane.b32.xlu0 %v1116_v13, %s2061_s16  ;;  %1046 = vrot.lane.b32.xlu2 %v2382_v20, %s2061_s16 }
 0x25d   :  { %1212 = vrot.lane.b32.xlu1 %v1186_v33, %s2062_s17 }
 0x25e   :  { %v2522_v34 = vpop.permute.xlu2 %721  ;;  %v931_v38 = vpop.permute.xlu0 %930 }
 0x25f   :  { %v1134_v40 = vpop.permute.xlu1 %1133  ;;  %v972_v41 = vadd.f32 %v931_v38, %v2442_v42 }
 0x260   :  { %v1152_v43 = vsel %vm1149_vm9, %v811_v25, %v1134_v40 }
 0x261   :  { %v1172_v45 = vadd.f32 %v1152_v43, %v759_v59  ;;  %v2566_v43 = vsel %vm870_vm11, %v2442_v42, -inf }
 0x264   :  { %1323 = vrot.lane.b32.xlu0 %v1116_v13, %s2063_s18  ;;  %1145 = vrot.lane.b32.xlu2 %v1186_v33, %s2060_s15 }
 0x265   :  { %1268 = vrot.lane.b32.xlu1 %v1186_v33, %s2061_s16 }
 0x266   :  { %v1205_v47 = vpop.permute.xlu2 %1204  ;;  %v611_v49 = vpop.permute.xlu0 %610 }
 0x267   :  { %v1201_v50 = vpop.permute.xlu1 %1200  ;;  %v2531_v54 = vadd.f32 %v1205_v47, %v1172_v45  ;;  %v660_v0 = vadd.f32 %v611_v49, %v2309_v61 }
 0x268   :  { %v1230_v6 = vadd.f32 %v1201_v50, %v2455_v48 }
 0x269   :  { %v2539_v10 = vsel %vm674_vm10, %v660_v0, -inf  ;;  %v658_v0 = vadd.f32 %v2448_v44, %v2295_v57 }
 0x26a   :  { %3167 = vst [vmem:[#allocation12_spill] sm:$0xff] %v2539_v10 }
 0x26c   :  { %1214 = vrot.lane.b32.xlu2 %v1187_v37, %s2062_s17  ;;  %731 = vrot.lane.b32.xlu0 %v2391_v23, %s2059_s14 }
 0x26d   :  { %1325 = vrot.lane.b32.xlu1 %v1186_v33, %s2063_s18 }
 0x26e   :  { %v1261_v13 = vpop.permute.xlu2 %1260  ;;  %v2547_v15 = vpop.permute.xlu0 %1339 }
 0x26f   :  { %3168 = vst [vmem:[#allocation13_spill] sm:$0xff] %v2547_v15  ;;  %v933_v48 = vpop.permute.xlu1 %932  ;;  %v1290_v19 = vadd.f32 %v1261_v13, %v1230_v6 }
 0x270   :  { %v2550_v59 = vadd.f32 %v933_v48, %v2466_v52 }
 0x274   :  { %1270 = vrot.lane.b32.xlu2 %v1187_v37, %s2061_s16  ;;  %824 = vrot.lane.b32.xlu0 %v2391_v23, %s2060_s15 }
 0x275   :  { %733 = vrot.lane.b32.xlu1 %v2399_v26, %s2059_s14 }
 0x276   :  { %v1041_v25 = vpop.permute.xlu2 %1040  ;;  %v815_v27 = vpop.permute.xlu0 %814 }
 0x277   :  { %v613_v30 = vpop.permute.xlu1 %612  ;;  %v2561_v33 = vadd.f32 %v1041_v25, %v2550_v59  ;;  %v858_v38 = vadd.f32 %v815_v27, %v761_v22 }
 0x278   :  { %v661_v40 = vadd.f32 %v613_v30, %v2315_v63  ;;  %v2605_v30 = vsel %vm986_vm12, %v972_v41, -inf }
 0x279   :  { %v2569_v61 = vsel %vm870_vm11, %v858_v38, -inf }
 0x27a   :  { %v2575_v55 = vsel %vm674_vm10, %v661_v40, -inf }
 0x27b   :  { %3170 = vst [vmem:[#allocation15_spill] sm:$0xff] %v2575_v55 }
 0x27c   :  { %1327 = vrot.lane.b32.xlu2 %v1187_v37, %s2063_s18  ;;  %944 = vrot.lane.b32.xlu0 %v2391_v23, %s2062_s17 }
 0x27d   :  { %826 = vrot.lane.b32.xlu1 %v2399_v26, %s2060_s15 }
 0x27e   :  { %v1140_v42 = vpop.permute.xlu2 %1139  ;;  %v935_v46 = vpop.permute.xlu0 %934 }
 0x27f   :  { %v1039_v47 = vpop.permute.xlu1 %1038  ;;  %v2587_v49 = vadd.f32 %v935_v46, %v2514_v28  ;;  %v2612_v46 = vsel %vm674_vm10, %v658_v0, -inf }
 0x280   :  { %v2589_v50 = vadd.f32 %v1039_v47, %v972_v41  ;;  %3171 = vst [vmem:[#allocation16_spill] sm:$0xff] %v2612_v46  ;;  %v1246_v41 = vld [vmem:[#allocation2 + $0xe8] sm:$0xff] }
 0x284   :  { %1048 = vrot.lane.b32.xlu0 %v2391_v23, %s2061_s16  ;;  %735 = vrot.lane.b32.xlu2 %v2407_v29, %s2059_s14 }
 0x285   :  { %1050 = vrot.lane.b32.xlu1 %v2399_v26, %s2061_s16 }
 0x286   :  { %v939_v6 = vpop.permute.xlu2 %938  ;;  %v2599_v13 = vpop.permute.xlu0 %723 }
 0x287   :  { %v615_v48 = vpop.permute.xlu1 %614  ;;  %v2601_v24 = vadd.f32 %v939_v6, %v858_v38 }
 0x288   :  { %v662_v25 = vadd.f32 %v615_v48, %v2319_v1 }
 0x289   :  { %v2609_v40 = vsel %vm986_vm12, %v2601_v24, -inf }
 0x28a   :  { %v2615_v57 = vsel %vm674_vm10, %v662_v25, -inf }
 0x28b   :  { %3172 = vst [vmem:[#allocation17_spill] sm:$0xff] %v2615_v57 }
 0x28c   :  { %1147 = vrot.lane.b32.xlu0 %v1187_v37, %s2060_s15  ;;  %828 = vrot.lane.b32.xlu2 %v2407_v29, %s2060_s15  ;;  %v762_v37 = vadd.f32 %v2484_v62, %v2315_v63  ;;  %v2683_v62 = vsel %vm870_vm11, %v2514_v28, -inf  ;;  %v764_v28 = vadd.f32 %v2599_v13, %v2330_v4  ;;  %v2721_v4 = vsel %vm870_vm11, %v2496_v12, -inf }
 0x28d   :  { %1272 = vrot.lane.b32.xlu1 %v1246_v41, %s2061_s16 }
 0x28e   :  { %v1265_v47 = vpop.permute.xlu2 %1264  ;;  %v1207_v0 = vpop.permute.xlu0 %1206 }
 0x28f   :  { %v1138_v6 = vpop.permute.xlu1 %1137  ;;  %v2626_v48 = vadd.f32 %v1265_v47, %v2531_v54  ;;  %v2629_v25 = vadd.f32 %v1207_v0, %v2505_v21 }
 0x290   :  { %v1154_v45 = vsel %vm1149_vm9, %v815_v27, %v1138_v6  ;;  %v2653_v6 = vsel %vm870_vm11, %v2466_v52, -inf }
 0x291   :  { %v2632_v38 = vadd.f32 %v1154_v45, %v761_v22 }
 0x294   :  { %946 = vrot.lane.b32.xlu0 %v2399_v26, %s2062_s17  ;;  %1052 = vrot.lane.b32.xlu2 %v2407_v29, %s2061_s16 }
 0x295   :  { %1329 = vrot.lane.b32.xlu1 %v1246_v41, %s2063_s18 }
 0x296   :  { %v1322_v54 = vpop.permute.xlu2 %1321  ;;  %v1263_v47 = vpop.permute.xlu0 %1262 }
 0x297   :  { %v817_v53 = vpop.permute.xlu1 %816  ;;  %v2641_v21 = vadd.f32 %v1322_v54, %v1290_v19  ;;  %v2644_v27 = vadd.f32 %v1263_v47, %v2516_v31  ;;  %v1247_v19 = vld [vmem:[#allocation2 + $0xf8] sm:$0xff] }
 0x298   :  { %v2646_v22 = vadd.f32 %v817_v53, %v762_v37  ;;  %v1155_v45 = vsel %vm1149_vm9, %v817_v53, %v1140_v42 }
 0x299   :  { %v2649_v0 = vadd.f32 %v1155_v45, %v762_v37 }
 0x29a   :  { %v2657_v63 = vsel %vm870_vm11, %v2646_v22, -inf }
 0x29c   :  { %1216 = vrot.lane.b32.xlu0 %v1246_v41, %s2062_s17  ;;  %1274 = vrot.lane.b32.xlu2 %v1247_v19, %s2061_s16  ;;  %v763_v41 = vadd.f32 %v2522_v34, %v2319_v1 }
 0x29d   :  { %948 = vrot.lane.b32.xlu1 %v2407_v29, %s2062_s17 }
 0x29e   :  { %v2665_v31 = vpop.permute.xlu2 %729  ;;  %v726_v53 = vpop.permute.xlu0 %725 }
 0x29f   :  { %v937_v52 = vpop.permute.xlu1 %936  ;;  %v765_v37 = vadd.f32 %v726_v53, %v2343_v7  ;;  %v3173_v7 = vmax.f32 %v2566_v43, %v2569_v61  ;;  %v1248_v53 = vld [vmem:[#allocation2 + $0x108] sm:$0xff] }
 0x2a0   :  { %v2668_v42 = vadd.f32 %v937_v52, %v2496_v12 }
 0x2a4   :  { %1331 = vrot.lane.b32.xlu2 %v1247_v19, %s2063_s18  ;;  %1054 = vrot.lane.b32.xlu0 %v2417_v32, %s2061_s16 }
 0x2a5   :  { %1218 = vrot.lane.b32.xlu1 %v1247_v19, %s2062_s17  ;;  %v2713_v19 = vsel %vm986_vm12, %v2587_v49, -inf }
 0x2a6   :  { %v823_v54 = vpop.permute.xlu2 %822  ;;  %v819_v47 = vpop.permute.xlu0 %818 }
 0x2a7   :  { %v2677_v45 = vpop.permute.xlu1 %727  ;;  %v2679_v44 = vadd.f32 %v823_v54, %v765_v37  ;;  %v860_v52 = vadd.f32 %v819_v47, %v763_v41 }
 0x2a9   :  { %v877_v35 = vsel %vm870_vm11, %v2679_v44, -inf  ;;  %v2688_v1 = vsel %vm870_vm11, %v860_v52, -inf }
 0x2aa   :  { %v2693_v34 = vmax.f32 %v3173_v7, %v877_v35 }
 0x2ac   :  { %1276 = vrot.lane.b32.xlu0 %v1248_v53, %s2061_s16  ;;  %737 = vrot.lane.b32.xlu2 %v2417_v32, %s2059_s14 }
 0x2ad   :  { %830 = vrot.lane.b32.xlu1 %v2417_v32, %s2060_s15 }
 0x2ae   :  { %v943_v55 = vpop.permute.xlu2 %942  ;;  %v1043_v18 = vpop.permute.xlu0 %1042 }
 0x2af   :  { %v821_v43 = vpop.permute.xlu1 %820  ;;  %v2704_v61 = vadd.f32 %v943_v55, %v860_v52  ;;  %v2707_v35 = vadd.f32 %v1043_v18, %v2587_v49 }
 0x2b0   :  { %v2709_v7 = vadd.f32 %v821_v43, %v764_v28 }
 0x2b1   :  { %v2717_v57 = vsel %vm986_vm12, %v2704_v61, -inf }
 0x2b2   :  { %v2725_v55 = vsel %vm870_vm11, %v2709_v7, -inf }
 0x2b4   :  { %1333 = vrot.lane.b32.xlu0 %v1248_v53, %s2063_s18  ;;  %950 = vrot.lane.b32.xlu2 %v2417_v32, %s2062_s17  ;;  %v2743_v53 = vsel %vm1086_vm13, %v2589_v50, -inf }
 0x2b5   :  { %1056 = vrot.lane.b32.xlu1 %v2428_v36, %s2061_s16 }
 0x2b6   :  { %v1047_v12 = vpop.permute.xlu2 %1046  ;;  %v1142_v49 = vpop.permute.xlu0 %1141 }
 0x2b7   :  { %v1045_v52 = vpop.permute.xlu1 %1044  ;;  %v1078_v46 = vadd.f32 %v1047_v12, %v2601_v24  ;;  %v1156_v16 = vsel %vm1149_vm9, %v819_v47, %v1142_v49 }
 0x2b8   :  { %v2739_v18 = vadd.f32 %v1045_v52, %v2668_v42  ;;  %v1176_v13 = vadd.f32 %v1156_v16, %v763_v41 }
 0x2b9   :  { %v2746_v10 = vsel %vm1086_vm13, %v1078_v46, -inf }
 0x2bc   :  { %832 = vrot.lane.b32.xlu2 %v2428_v36, %s2060_s15  ;;  %739 = vrot.lane.b32.xlu0 %v2428_v36, %s2059_s14 }
 0x2bd   :  { %1278 = vrot.lane.b32.xlu1 %v1249_v8, %s2061_s16 }
 0x2be   :  { %v1146_v16 = vpop.permute.xlu2 %1145  ;;  %v1209_v24 = vpop.permute.xlu0 %1208 }
 0x2bf   :  { %v1144_v41 = vpop.permute.xlu1 %1143  ;;  %v1158_v50 = vsel %vm1149_vm9, %v823_v54, %v1146_v16  ;;  %v1234_v46 = vadd.f32 %v1209_v24, %v2632_v38 }
 0x2c0   :  { %v1157_v47 = vsel %vm1149_vm9, %v821_v43, %v1144_v41  ;;  %v2758_v12 = vadd.f32 %v1158_v50, %v765_v37  ;;  %v2771_v37 = vsel %vm986_vm12, %v2550_v59, -inf }
 0x2c1   :  { %v1177_v49 = vadd.f32 %v1157_v47, %v764_v28 }
 0x2c4   :  { %616 = vrot.lane.b32.xlu2 %v2353_v11, %s2058_s2  ;;  %952 = vrot.lane.b32.xlu0 %v2428_v36, %s2062_s17 }
 0x2c5   :  { %1335 = vrot.lane.b32.xlu1 %v1249_v8, %s2063_s18 }
 0x2c6   :  { %v1215_v52 = vpop.permute.xlu2 %1214  ;;  %v941_v9 = vpop.permute.xlu0 %940 }
 0x2c7   :  { %v1211_v15 = vpop.permute.xlu1 %1210  ;;  %v2765_v60 = vadd.f32 %v1215_v52, %v1177_v49  ;;  %v977_v38 = vadd.f32 %v941_v9, %v2646_v22 }
 0x2c8   :  { %v1235_v54 = vadd.f32 %v1211_v15, %v2649_v0 }
 0x2c9   :  { %v2774_v28 = vsel %vm986_vm12, %v977_v38, -inf }
 0x2ca   :  { %v1003_v43 = vmax.f32 %v2771_v37, %v2774_v28 }
 0x2cc   :  { %622 = vrot.lane.b32.xlu2 %v2382_v20, %s2058_s2  ;;  %618 = vrot.lane.b32.xlu0 %v2364_v14, %s2058_s2 }
 0x2cd   :  { %620 = vrot.lane.b32.xlu1 %v2373_v17, %s2058_s2 }
 0x2ce   :  { %v1271_v8 = vpop.permute.xlu2 %1270  ;;  %v1267_v9 = vpop.permute.xlu0 %1266 }
 0x2cf   :  { %v1213_v15 = vpop.permute.xlu1 %1212  ;;  %v1295_v59 = vadd.f32 %v1271_v8, %v1235_v54  ;;  %v1293_v22 = vadd.f32 %v1267_v9, %v2629_v25 }
 0x2d0   :  { %v2785_v0 = vadd.f32 %v1213_v15, %v1176_v13 }
 0x2d4   :  { %628 = vrot.lane.b32.xlu2 %v2407_v29, %s2058_s2  ;;  %624 = vrot.lane.b32.xlu0 %v2391_v23, %s2058_s2 }
 0x2d5   :  { %626 = vrot.lane.b32.xlu1 %v2399_v26, %s2058_s2 }
 0x2d6   :  { %v1328_v16 = vpop.permute.xlu2 %1327  ;;  %v1324_v24 = vpop.permute.xlu0 %1323 }
 0x2d7   :  { %v1269_v41 = vpop.permute.xlu1 %1268  ;;  %v2793_v50 = vadd.f32 %v1328_v16, %v1293_v22  ;;  %v1352_v47 = vadd.f32 %v1324_v24, %v2644_v27  ;;  %v766_v27 = vadd.f32 %v2677_v45, %v2353_v11  ;;  %v3175_v11 = vmax.f32 %v2653_v6, %v2657_v63 }
 0x2d8   :  { %v1294_v49 = vadd.f32 %v1269_v41, %v1234_v46  ;;  %v767_v22 = vadd.f32 %v2665_v31, %v2364_v14  ;;  %v2844_v31 = vsel %vm1086_vm13, %v2739_v18, -inf  ;;  %v2861_v18 = vsel %vm1086_vm13, %v2561_v33, -inf }
 0x2dc   :  { %634 = vrot.lane.b32.xlu2 %v2322_v2, %s2058_s2  ;;  %630 = vrot.lane.b32.xlu0 %v2417_v32, %s2058_s2 }
 0x2dd   :  { %632 = vrot.lane.b32.xlu1 %v2428_v36, %s2058_s2 }
 0x2de   :  { %v2802_v29 = vpop.permute.xlu2 %735  ;;  %v732_v25 = vpop.permute.xlu0 %731 }
 0x2df   :  { %v1326_v13 = vpop.permute.xlu1 %1325  ;;  %v768_v2 = vadd.f32 %v732_v25, %v2373_v17 }
 0x2e0   :  { %v2805_v52 = vadd.f32 %v1326_v13, %v2626_v48 }
 0x2e4   :  { %636 = vrot.lane.b32.xlu0 %v2333_v5, %s2058_s2  ;;  %v3174_v5 = vmax.f32 %v2721_v4, %v2725_v55 }
 0x2e6   :  { %v829_v46 = vpop.permute.xlu2 %828  ;;  %v825_v32 = vpop.permute.xlu0 %824 }
 0x2e7   :  { %v2812_v54 = vpop.permute.xlu1 %733  ;;  %v2814_v36 = vadd.f32 %v829_v46, %v768_v2  ;;  %v863_v8 = vadd.f32 %v825_v32, %v766_v27  ;;  %v2834_v2 = vsel %vm986_vm12, %v2668_v42, -inf }
 0x2e9   :  { %v894_v9 = vsel %vm870_vm11, %v2814_v36, -inf  ;;  %v892_v48 = vsel %vm870_vm11, %v863_v8, -inf }
 0x2ea   :  { %v2822_v15 = vmax.f32 %v3174_v5, %v894_v9  ;;  %v2827_v45 = vmax.f32 %v3175_v11, %v892_v48 }
 0x2ee   :  { %v1053_v16 = vpop.permute.xlu2 %1052  ;;  %v945_v24 = vpop.permute.xlu0 %944 }
 0x2ef   :  { %v827_v41 = vpop.permute.xlu1 %826  ;;  %v979_v25 = vadd.f32 %v945_v24, %v2709_v7  ;;  %v3176_v7 = vmax.f32 %v2683_v62, %v2688_v1  ;;  %v1088_v1 = vsel %vm1086_vm13, %v2707_v35, -inf }
 0x2f0   :  { %v864_v13 = vadd.f32 %v827_v41, %v767_v22 }
 0x2f1   :  { %v2837_v4 = vsel %vm986_vm12, %v979_v25, -inf  ;;  %v1081_v55 = vadd.f32 %v1053_v16, %v979_v25 }
 0x2f2   :  { %v879_v6 = vsel %vm870_vm11, %v864_v13, -inf }
 0x2f3   :  { %v2849_v46 = vmax.f32 %v3176_v7, %v879_v6  ;;  %v2852_v42 = vsel %vm1086_vm13, %v1081_v55, -inf }
 0x2f6   :  { %v2856_v48 = vpop.permute.xlu2 %1274  ;;  %v1049_v5 = vpop.permute.xlu0 %1048 }
 0x2f7   :  { %v1051_v11 = vpop.permute.xlu1 %1050  ;;  %v1079_v22 = vadd.f32 %v1049_v5, %v977_v38  ;;  %v2877_v5 = vsel %vm1361_vm14, %v1352_v47, -inf }
 0x2f8   :  { %v1080_v16 = vadd.f32 %v1051_v11, %v2704_v61 }
 0x2f9   :  { %v2864_v62 = vsel %vm1086_vm13, %v1079_v22, -inf }
 0x2fa   :  { %v1091_v24 = vsel %vm1086_vm13, %v1080_v16, -inf }
 0x2fb   :  { %v1092_v25 = vmax.f32 %v1088_v1, %v1091_v24 }
 0x2fe   :  { %v1332_v55 = vpop.permute.xlu2 %1331  ;;  %v1148_v38 = vpop.permute.xlu0 %1147 }
 0x2ff   :  { %v2871_v6 = vpop.permute.xlu1 %1272  ;;  %v1356_v61 = vadd.f32 %v1332_v55, %v1295_v59  ;;  %v1159_v33 = vsel %vm1149_vm9, %v825_v32, %v1148_v38  ;;  %v3177_v55 = vmax.f32 %v2605_v30, %v2609_v40 }
 0x300   :  { %v2874_v7 = vadd.f32 %v1159_v33, %v766_v27  ;;  %v1362_v27 = vsel %vm1361_vm14, %v2641_v21, -inf  ;;  %v3178_v21 = vmax.f32 %v2713_v19, %v2717_v57 }
 0x301   :  { %v2880_v35 = vsel %vm1361_vm14, %v1356_v61, -inf }
 0x306   :  { %v738_v22 = vpop.permute.xlu2 %737  ;;  %v947_v16 = vpop.permute.xlu0 %946 }
 0x307   :  { %v1330_v1 = vpop.permute.xlu1 %1329  ;;  %v980_v24 = vadd.f32 %v947_v16, %v2679_v44 }
 0x308   :  { %v1355_v59 = vadd.f32 %v1330_v1, %v1294_v49 }
 0x309   :  { %v993_v32 = vsel %vm986_vm12, %v980_v24, -inf }
 0x30a   :  { %v1364_v47 = vsel %vm1361_vm14, %v1355_v59, -inf  ;;  %v994_v38 = vmax.f32 %v3177_v55, %v993_v32 }
 0x30b   :  { %v1365_v61 = vmax.f32 %v1362_v27, %v1364_v47  ;;  %v771_v27 = vadd.f32 %v738_v22, %v2399_v26 }
 0x30d   :  { %v868_v47 = vadd.f32 %v2464_v51, %v771_v27 }
 0x30e   :  { %v951_v33 = vpop.permute.xlu2 %950  ;;  %v1217_v9 = vpop.permute.xlu0 %1216 }
 0x30f   :  { %v949_v63 = vpop.permute.xlu1 %948  ;;  %v982_v11 = vadd.f32 %v951_v33, %v864_v13  ;;  %v1238_v55 = vadd.f32 %v1217_v9, %v2758_v12  ;;  %v883_v33 = vsel %vm870_vm11, %v868_v47, -inf }
 0x310   :  { %v981_v41 = vadd.f32 %v949_v63, %v863_v8  ;;  %v770_v8 = vadd.f32 %v2802_v29, %v2391_v23  ;;  %v884_v12 = vmax.f32 %v2849_v46, %v883_v33 }
 0x311   :  { %v995_v44 = vsel %vm986_vm12, %v982_v11, -inf  ;;  %v1084_v49 = vadd.f32 %v2439_v39, %v982_v11 }
 0x312   :  { %v1006_v16 = vsel %vm986_vm12, %v981_v41, -inf  ;;  %v996_v1 = vmax.f32 %v3178_v21, %v995_v44 }
 0x313   :  { %v2901_v30 = vmax.f32 %v1003_v43, %v1006_v16  ;;  %v1095_v40 = vsel %vm1086_vm13, %v1084_v49, -inf  ;;  %v3179_v43 = vmax.f32 %v2743_v53, %v2746_v10 }
 0x314   :  { %v1096_v59 = vmax.f32 %v1092_v25, %v1095_v40 }
 0x316   :  { %v833_v13 = vpop.permute.xlu2 %832  ;;  %v1055_v63 = vpop.permute.xlu0 %1054 }
 0x317   :  { %v1219_v39 = vpop.permute.xlu1 %1218  ;;  %v867_v11 = vadd.f32 %v833_v13, %v770_v8  ;;  %v1082_v32 = vadd.f32 %v1055_v63, %v980_v24 }
 0x319   :  { %v896_v57 = vsel %vm870_vm11, %v867_v11, -inf  ;;  %v985_v19 = vadd.f32 %v2486_v3, %v867_v11  ;;  %v1093_v37 = vsel %vm1086_vm13, %v1082_v32, -inf  ;;  %v769_v3 = vadd.f32 %v2812_v54, %v2382_v20 }
 0x31a   :  { %v897_v28 = vmax.f32 %v2827_v45, %v896_v57  ;;  %v1094_v25 = vmax.f32 %v3179_v43, %v1093_v37 }
 0x31b   :  { %v2915_v29 = vsel %vm986_vm12, %v985_v19, -inf }
 0x31c   :  { %v1011_v22 = vmax.f32 %v2901_v30, %v2915_v29  ;;  %v1097_v24 = vmax.f32 %v1094_v25, %v1096_v59  ;;  %v1296_v59 = vadd.f32 %v2871_v6, %v2785_v0  ;;  %v3180_v6 = vmax.f32 %v2861_v18, %v2864_v62  ;;  %v3181_v25 = vld [vmem:[#allocation8_spill] sm:$0xff] }
 0x31e   :  { %1398 = vrot.lane.b32.xlu2 %v1097_v24, %s2064_s19  ;;  %v1277_v45 = vpop.permute.xlu0 %1276  ;;  %v617_v27 = vpop.permute.xlu2 %616  ;;  %v3182_v24 = vld [vmem:[#allocation13_spill] sm:$0xff] }
 0x31f   :  { %v831_v10 = vpop.permute.xlu1 %830  ;;  %v1298_v53 = vadd.f32 %v1277_v45, %v1238_v55  ;;  %v1297_v45 = vadd.f32 %v2856_v48, %v2765_v60  ;;  %v3185_v60 = vmax.f32 %v2834_v2, %v2837_v4  ;;  %v2976_v2 = vld [vmem:[#allocation2 + $0x80] sm:$0xff] }
 0x320   :  { %v866_v44 = vadd.f32 %v831_v10, %v769_v3 }
 0x321   :  { %v1359_v51 = vadd.f32 %v2473_v56, %v1298_v53 }
 0x322   :  { %v881_v49 = vsel %vm870_vm11, %v866_v44, -inf  ;;  %v984_v16 = vadd.f32 %v2475_v58, %v866_v44 }
 0x323   :  { %v882_v9 = vmax.f32 %v2693_v34, %v881_v49  ;;  %v1368_v54 = vsel %vm1361_vm14, %v1359_v51, -inf  ;;  %v1363_v34 = vsel %vm1361_vm14, %v2805_v52, -inf }
 0x324   :  { %v997_v21 = vsel %vm986_vm12, %v984_v16, -inf  ;;  %v1369_v40 = vmax.f32 %v1365_v61, %v1368_v54 }
 0x325   :  { %v998_v8 = vmax.f32 %v994_v38, %v997_v21  ;;  %v885_v13 = vmax.f32 %v882_v9, %v884_v12  ;;  %v3184_v12 = vld [vmem:[#allocation9_spill] sm:$0xff] }
 0x326   :  { %v1334_v63 = vpop.permute.xlu0 %1333  ;;  %v623_v10 = vpop.permute.xlu2 %622 }
 0x327   :  { %v1057_v56 = vpop.permute.xlu1 %1056  ;;  %1382 = vrot.lane.b32.xlu1 %v885_v13, %s2058_s2  ;;  %v1357_v11 = vadd.f32 %v1334_v63, %v1296_v59  ;;  %v999_v58 = vmax.f32 %v998_v8, %v996_v1  ;;  %v1239_v1 = vadd.f32 %v1219_v39, %v2874_v7  ;;  %v3183_v7 = vmax.f32 %v2877_v5, %v2880_v35 }
 0x328   :  { %v1083_v32 = vadd.f32 %v1057_v56, %v981_v41  ;;  %v2944_v41 = vld [vmem:[#allocation2 + $0xf0] sm:$0xff]  ;;  %v1372_v5 = vsel %vm1361_vm14, %v2793_v50, -inf  ;;  %v666_v29 = vadd.f32 %v623_v10, %v2364_v14 }
 0x329   :  { %v1366_v46 = vsel %vm1361_vm14, %v1357_v11, -inf  ;;  %1390 = vrot.lane.b32.xlu0 %v999_v58, %s2065_s20  ;;  %v2983_v11 = vld [vmem:[#allocation2 + $0x100] sm:$0xff]  ;;  %v3187_v58 = vld [vmem:[#allocation11_spill] sm:$0xff]  ;;  %v1984_v14 = vld [vmem:[#allocation2 + $0x70] sm:$0xff] }
 0x32a   :  { %v1104_v61 = vsel %vm1086_vm13, %v1083_v32, -inf  ;;  %v1367_v0 = vmax.f32 %v1363_v34, %v1366_v46  ;;  %v3188_v32 = vld [vmem:[#allocation12_spill] sm:$0xff] }
 0x32b   :  { %v1105_v38 = vmax.f32 %v3180_v6, %v1104_v61  ;;  %v3189_v34 = vmax.f32 %v3187_v58, %v3188_v32  ;;  %v683_v61 = vsel %vm674_vm10, %v666_v29, -inf  ;;  %v1983_v6 = vld [vmem:[#allocation2 + $0x90] sm:$0xff]  ;;  %v1909_v58 = vld [vmem:[%s3149_s4] sm:$0xff]  ;;  %v1988_v32 = vld [vmem:[#allocation2 + $0x40] sm:$0xff] }
 0x32c   :  { %v1370_v57 = vmax.f32 %v1369_v40, %v1367_v0  ;;  %v1987_v29 = vld [vmem:[#allocation2 + $0x10] sm:$0xff] }
 0x32e   :  { %v740_v19 = vpop.permute.xlu0 %739  ;;  %v629_v13 = vpop.permute.xlu2 %628 }
 0x32f   :  { %v1279_v52 = vpop.permute.xlu1 %1278  ;;  %v772_v37 = vadd.f32 %v740_v19, %v2944_v41  ;;  %v669_v10 = vadd.f32 %v629_v13, %v2391_v23 }
 0x330   :  { %v1299_v43 = vadd.f32 %v1279_v52, %v1239_v1  ;;  %v663_v1 = vadd.f32 %v1984_v14, %v617_v27  ;;  %v1985_v52 = vld [vmem:[#allocation2 + $0x30] sm:$0xff] }
 0x331   :  { %v869_v47 = vadd.f32 %v3181_v25, %v772_v37  ;;  %v3190_v37 = vld [vmem:[#allocation10_spill] sm:$0xff]  ;;  %v3191_v25 = vld [vmem:[#allocation16_spill] sm:$0xff] }
 0x332   :  { %v1360_v55 = vadd.f32 %v3182_v24, %v1299_v43  ;;  %v659_v43 = vadd.f32 %v1985_v52, %v3190_v37 }
 0x333   :  { %v898_v3 = vsel %vm870_vm11, %v869_v47, -inf  ;;  %v3192_v47 = vld [vmem:[#allocation17_spill] sm:$0xff] }
 0x334   :  { %v1377_v18 = vsel %vm1361_vm14, %v1360_v55, -inf  ;;  %v899_v62 = vmax.f32 %v2822_v15, %v898_v3  ;;  %v3193_v24 = vmax.f32 %v3191_v25, %v3192_v47  ;;  %v533_v47 = vsel %vm526_vm0, %v2976_v2, -inf }
 0x335   :  { %v1378_v39 = vmax.f32 %v3183_v7, %v1377_v18 }
 0x336   :  { %v953_v53 = vpop.permute.xlu0 %952  ;;  %v900_v33 = vmax.f32 %v897_v28, %v899_v62  ;;  %v635_v63 = vpop.permute.xlu2 %634  ;;  %v684_v55 = vmax.f32 %v3193_v24, %v683_v61  ;;  %v1994_v24 = vld [vmem:[#allocation2 + $0xd0] sm:$0xff] }
 0x337   :  { %v1336_v44 = vpop.permute.xlu1 %1335  ;;  %v983_v51 = vadd.f32 %v953_v53, %v2814_v36  ;;  %v3186_v36 = vmax.f32 %v2844_v31, %v2852_v42  ;;  %v672_v0 = vadd.f32 %v635_v63, %v2983_v11  ;;  %v547_v63 = vsel %vm526_vm0, %v1985_v52, -inf }
 0x338   :  { %v1358_v49 = vadd.f32 %v1336_v44, %v1297_v45  ;;  %1384 = vrot.lane.b32.xlu2 %v900_v33, %s2058_s2  ;;  %v3194_v33 = vld [vmem:[#allocation14_spill] sm:$0xff]  ;;  %v3195_v44 = vld [vmem:[#allocation15_spill] sm:$0xff] }
 0x339   :  { %v1008_v16 = vsel %vm986_vm12, %v983_v51, -inf  ;;  %v1085_v15 = vadd.f32 %v3184_v12, %v983_v51  ;;  %v689_v18 = vsel %vm674_vm10, %v672_v0, -inf  ;;  %v3196_v51 = vmax.f32 %v3194_v33, %v3195_v44  ;;  %v525_v44 = vld [vmem:[#allocation2 + $0x130] sm:$0xff] }
 0x33a   :  { %v1375_v35 = vsel %vm1361_vm14, %v1358_v49, -inf  ;;  %v1009_v48 = vmax.f32 %v3185_v60, %v1008_v16  ;;  %v693_v12 = vsel %vm674_vm10, %v659_v43, -inf  ;;  %v702_v60 = vsel %vm674_vm10, %v669_v10, -inf  ;;  %v1993_v43 = vld [vmem:[#allocation2 + $0xa0] sm:$0xff] }
 0x33b   :  { %v1376_v28 = vmax.f32 %v1372_v5, %v1375_v35  ;;  %v1106_v9 = vsel %vm1086_vm13, %v1085_v15, -inf  ;;  %v523_v5 = vld [vmem:[#allocation2 + $0x110] sm:$0xff]  ;;  %v552_v0 = vsel %vm526_vm0, %v1983_v6, -inf  ;;  %v535_v25 = vsel %vm526_vm0, %v1993_v43, -inf }
 0x33c   :  { %v1107_v54 = vmax.f32 %v3186_v36, %v1106_v9  ;;  %v1012_v21 = vmax.f32 %v1011_v22, %v1009_v48  ;;  %v560_v10 = vsel %vm526_vm0, %v523_v5, -inf }
 0x33d   :  { %v1379_v40 = vmax.f32 %v1378_v39, %v1376_v28 }
 0x33e   :  { %1392 = vrot.lane.b32.xlu1 %v1012_v21, %s2065_s20  ;;  %v619_v50 = vpop.permute.xlu0 %618  ;;  %v1108_v59 = vmax.f32 %v1105_v38, %v1107_v54 }
 0x33f   :  { %v621_v8 = vpop.permute.xlu1 %620  ;;  %v664_v4 = vadd.f32 %v2976_v2, %v619_v50  ;;  %v1438_v50 = vld [vmem:[%s3149_s4 + $0x10] sm:$0xf] }
 0x340   :  { %1408 = vrot.lane.b32.xlu2 %v1379_v40, %s2066_s21  ;;  %1400 = vrot.lane.b32.xlu0 %v1108_v59, %s2064_s19  ;;  %v665_v38 = vadd.f32 %v1983_v6, %v621_v8  ;;  %v1452_v59 = vunpack.c.l.b16 %v1438_v50  ;;  %v556_v6 = vsel %vm526_vm0, %v1994_v24, -inf }
 0x341   :  { %v681_v22 = vsel %vm674_vm10, %v664_v4, -inf  ;;  %v1910_v4 = vld [vmem:[%s3149_s4 + $0x8] sm:$0xff] }
 0x342   :  { %v682_v46 = vmax.f32 %v3189_v34, %v681_v22  ;;  %v698_v62 = vsel %vm674_vm10, %v665_v38, -inf  ;;  %v1455_v8 = vpack.c.b16 %v1452_v59, %v1452_v59  ;;  %v546_v22 = vsel %vm526_vm0, %v1987_v29, -inf  ;;  %v1990_v38 = vld [vmem:[#allocation2 + $0xb0] sm:$0xff] }
 0x343   :  { %v699_v49 = vmax.f32 %v3196_v51, %v698_v62  ;;  %v529_v34 = vsel %vm526_vm0, %v1988_v32, -inf }
 0x344   :  { %v1464_v13 = vsel %vm1462_vm15, %v1455_v8, 0 }
 0x345   :  { %v703_v9 = vmax.f32 %v699_v49, %v702_v60  ;;  %1471 = vmatpush.bf16.msrb.mxu3 %v1464_v13 }
 0x346   :  { %1406 = vrot.lane.b32.xlu1 %v1370_v57, %s2066_s21  ;;  %v625_v31 = vpop.permute.xlu0 %624 }
 0x347   :  { %v627_v42 = vpop.permute.xlu1 %626  ;;  %v667_v7 = vadd.f32 %v625_v31, %v2373_v17  ;;  %v1986_v31 = vld [vmem:[#allocation2 + $0x50] sm:$0xff] }
 0x348   :  { %v668_v30 = vadd.f32 %v627_v42, %v2382_v20  ;;  %v548_v42 = vsel %vm526_vm0, %v1986_v31, -inf }
 0x349   :  { %v700_v17 = vsel %vm674_vm10, %v667_v7, -inf  ;;  %1472 = vmatpush.bf16.msrb.mxu3 %v1910_v4  ;;  %v549_v52 = vmax.f32 %v546_v22, %v548_v42  ;;  %v1967_v4 = vld [vmem:[%s3148_s3] ss:$0 sm:$0xff]  ;;  %s2067_s3 = smov 40  }
 0x34a   :  { %v685_v56 = vsel %vm674_vm10, %v668_v30, -inf  ;;  %v550_v30 = vsel %vm526_vm0, %v1984_v14, -inf }
 0x34b   :  { %v686_v20 = vmax.f32 %v682_v46, %v685_v56  ;;  %v1989_v46 = vld [vmem:[#allocation2 + $0x60] sm:$0xff]  ;;  %v551_v37 = vmax.f32 %v547_v63, %v550_v30  ;;  %v553_v62 = vmax.f32 %v549_v52, %v552_v0 }
 0x34c   :  { %v531_v61 = vsel %vm526_vm0, %v1989_v46, -inf }
 0x34d   :  { %v690_v45 = vmax.f32 %v686_v20, %v689_v18  ;;  %v554_v20 = vsel %vm526_vm0, %v1990_v38, -inf  ;;  %1473 = vmatpush.bf16.msrb.mxu3 %v1909_v58  ;;  %v557_v51 = vmax.f32 %v553_v62, %v556_v6  ;;  %v1968_v38 = vld [vmem:[%s3150_s5] ss:$0 sm:$0xff] }
 0x34e   :  { %v631_v57 = vpop.permute.xlu0 %630  ;;  %v555_v7 = vmax.f32 %v551_v37, %v554_v20 }
 0x34f   :  { %v670_v19 = vadd.f32 %v631_v57, %v2399_v26  ;;  %v633_v3 = vpop.permute.xlu1 %632  ;;  %v696_v26 = vsel %vm674_vm10, %v663_v1, -inf  ;;  %v1991_v57 = vld [vmem:[#allocation2] sm:$0xff] }
 0x350   :  { %v671_v53 = vadd.f32 %v633_v3, %v2944_v41  ;;  %v697_v15 = vmax.f32 %v693_v12, %v696_v26  ;;  %v527_v14 = vsel %vm526_vm0, %v1991_v57, -inf  ;;  %v1992_v1 = vld [vmem:[#allocation2 + $0x20] sm:$0xff] }
 0x351   :  { %v687_v39 = vsel %vm674_vm10, %v670_v19, -inf  ;;  %v528_v19 = vsel %vm526_vm0, %v1992_v1, -inf  ;;  %v530_v3 = vmax.f32 %v527_v14, %v529_v34 }
 0x352   :  { %v688_v27 = vmax.f32 %v684_v55, %v687_v39  ;;  %v704_v48 = vsel %vm674_vm10, %v671_v53, -inf  ;;  %v701_v28 = vmax.f32 %v697_v15, %v700_v17  ;;  %v558_v55 = vsel %vm526_vm0, %v2944_v41, -inf  ;;  %v1995_v39 = vld [vmem:[#allocation2 + $0xc0] sm:$0xff] }
 0x353   :  { %v532_v18 = vmax.f32 %v528_v19, %v531_v61  ;;  %v534_v2 = vmax.f32 %v530_v3, %v533_v47  ;;  %v559_v33 = vmax.f32 %v555_v7, %v558_v55  ;;  %v541_v41 = vsel %vm526_vm0, %v2983_v11, -inf  ;;  %v524_v17 = vld [vmem:[#allocation2 + $0x120] sm:$0xff] }
 0x354   :  { %v3005_v16 = vmax.f32 %v690_v45, %v688_v27  ;;  %v705_v54 = vmax.f32 %v701_v28, %v704_v48  ;;  %v537_v45 = vsel %vm526_vm0, %v1995_v39, -inf  ;;  %v1996_v27 = vld [vmem:[#allocation2 + $0xe0] sm:$0xff]  ;;  %v562_v48 = vsel %vm526_vm0, %v525_v44, -inf }
 0x355   :  { %v539_v26 = vsel %vm526_vm0, %v1996_v27, -inf  ;;  %v536_v53 = vmax.f32 %v532_v18, %v535_v25  ;;  %v538_v15 = vmax.f32 %v534_v2, %v537_v45  ;;  %v1549_v18 = vld [vmem:[%s3151_s6 + $0x10] sm:$0xf] }
 0x356   :  { %v637_v35 = vpop.permute.xlu0 %636  ;;  %v1566_v62 = vunpack.c.l.b16 %v1549_v18 }
 0x357   :  { %v673_v23 = vadd.f32 %v637_v35, %v523_v5  ;;  %v540_v12 = vmax.f32 %v536_v53, %v539_v26  ;;  %v561_v35 = vmax.f32 %v557_v51, %v560_v10  ;;  %v542_v28 = vmax.f32 %v538_v15, %v541_v41  ;;  %v1912_v10 = vld [vmem:[%s3151_s6 + $0x8] sm:$0xff] }
 0x358   :  { %v543_v5 = vsel %vm526_vm0, %v524_v17, -inf  ;;  %v1569_v39 = vpack.c.b16 %v1566_v62, %v1566_v62 }
 0x359   :  { %v706_v36 = vsel %vm674_vm10, %v673_v23, -inf }
 0x35a   :  { %v707_v21 = vmax.f32 %v703_v9, %v706_v36  ;;  %v563_v9 = vmax.f32 %v559_v33, %v562_v48  ;;  %v544_v36 = vmax.f32 %v540_v12, %v543_v5  ;;  %v1576_v27 = vsel %vm1462_vm15, %v1569_v39, 0  ;;  %v1911_v33 = vld [vmem:[%s3151_s6] sm:$0xff] }
 0x35b   :  { %1583 = vmatpush.bf16.msra.mxu3 %v1576_v27 }
 0x35c   :  { %v3012_v40 = vmax.f32 %v707_v21, %v705_v54  ;;  %v564_v54 = vmax.f32 %v561_v35, %v563_v9  ;;  %v545_v21 = vmax.f32 %v542_v28, %v544_v36 }
 0x35e   :  { %v1413_v11 = vsel %vm526_vm0, %v564_v54, %v3012_v40  ;;  %v1412_v8 = vsel %vm526_vm0, %v545_v21, %v3005_v16 }
 0x35f   :  { %1584 = vmatpush.bf16.msra.mxu3 %v1912_v10 }
 0x363   :  { %1585 = vmatpush.bf16.msra.mxu3 %v1911_v33 }
 0x378   :  { %v3025_v56 = vpop.permute.xlu2 %1398 }
 0x392   :  { %v1385_v60 = vpop.permute.xlu2 %1384 }
 0x393   :  { %v1416_v50 = vsel %vm1414_vm1, %v1413_v11, %v1385_v60 }
 0x399   :  { %v1383_v49 = vpop.permute.xlu1 %1382 }
 0x39a   :  { %v1415_v31 = vsel %vm1414_vm1, %v1412_v8, %v1383_v49  ;;  %v1409_v30 = vpop.permute.xlu2 %1408 }
 0x39b   :  { %v1391_v23 = vpop.permute.xlu0 %1390 }
 0x39c   :  { %v1417_v40 = vsel %vm316_vm7, %v1415_v31, %v1391_v23 }
 0x39d   :  { %v1420_v16 = vsel %vm1419_vm4, %v1417_v40, %v3025_v56  ;;  %v3090_v40 = vld [vmem:[%s3153_s8 + $0x8] sm:$0xf] }
 0x3b0   :  { %v1393_v59 = vpop.permute.xlu1 %1392 }
 0x3b1   :  { %v1418_v13 = vsel %vm316_vm7, %v1416_v50, %v1393_v59 }
 0x3b2   :  { %v1401_v42 = vpop.permute.xlu0 %1400 }
 0x3b3   :  { %v1421_v29 = vsel %vm1419_vm4, %v1418_v13, %v1401_v42 }
 0x3b4   :  { %v1424_v22 = vsel %vm1422_vm2, %v1421_v29, %v1409_v30  ;;  %v3080_v29 = vld [vmem:[%s3153_s8] sm:$0xf] }
 0x3b5   :  { %v1430_v63 = vadd.f32 %v1967_v4, %v1424_v22  ;;  %v3085_v22 = vld [vmem:[%s3153_s8] sm:$0xf0] }
 0x3b7   :  { %1970 = vtanh.f32 %v1430_v63  ;;  %v3095_v63 = vld [vmem:[%s3153_s8 + $0x8] sm:$0xf0] }
 0x3b8   :  { %v1407_v58 = vpop.permute.xlu1 %1406 }
 0x3b9   :  { %v1423_v32 = vsel %vm1422_vm2, %v1420_v16, %v1407_v58  ;;  %v1969_v58 = vld [vmem:[%s3152_s7] ss:$0 sm:$0xff]  ;;  %s3104_s7 = smov 0  }
 0x3ba   :  { %v1429_v34 = vadd.f32 %v1967_v4, %v1423_v32 }
 0x3bc   :  { %1972 = vtanh.f32 %v1429_v34 }
 0x3bd   :  { %v1971_v46 = vpop.eup %1970 }
 0x3be   :  { %1524 = vrot.lane.b32.xlu1 %v1971_v46, %s2067_s3 }
 0x3c2   :  { %v1973_v61 = vpop.eup %1972 }
 0x3c3   :  { %v1433_v0 = vpack.c.bf16 %v1971_v46, %v1973_v61  ;;  %1522 = vrot.lane.b32.xlu0 %v1973_v61, %s2067_s3 }
 0x3c5   :  { %1872 = vmatmul.msk.bf16.vlgmr.msrb.gmra.mxu3 %vm1458_vm5, %v1433_v0 }
 0x430   :  { %v1525_v11 = vpop.permute.xlu1 %1524 }
 0x435   :  { %v1523_v35 = vpop.permute.xlu0 %1522 }
 0x448   :  { %v1475_v20 = vpop.f32.mrf.mxu3 }
 0x449   :  { %v1476_v57 = vadd.f32 %v1968_v38, %v1475_v20 }
 0x44b   :  { %v1480_v56 = vmax.f32 %v1476_v57, 0.0  ;;  %v1873_v52 = vmul.f32 -1.442695, %v1476_v57 }
 0x44d   :  { %1534 = vrot.lane.b32.xlu2 %v1480_v56, %s2067_s3  ;;  %1974 = vpow2.f32 %v1873_v52 }
 0x450   :  { %v1477_v14 = vpop.f32.mrf.mxu3 }
 0x451   :  { %v1478_v1 = vadd.f32 %v1968_v38, %v1477_v14  ;;  %v3100_v14 = vmov 0.0  }
 0x453   :  { %v1481_v19 = vmax.f32 %v1478_v1, 0.0  ;;  %v1874_v37 = vmul.f32 -1.442695, %v1478_v1  ;;  %v1975_v43 = vpop.eup %1974  ;;  %v3102_v1 = vmov 0.0  }
 0x454   :  { %v1488_v47 = vadd.f32 1.0, %v1975_v43 }
 0x455   :  { %1536 = vrot.lane.b32.xlu0 %v1481_v19, %s2067_s3  ;;  %1976 = vpow2.f32 %v1874_v37 }
 0x456   :  { %1978 = vrcp.f32 %v1488_v47  ;;  %v1501_v51 = vand.u32 2147483648, %v1488_v47  ;;  %vm1495_vm7 = vweird.f32 %v1488_v47  ;;  %v1499_v41 = vand.u32 2147483647, %v1488_v47 }
 0x458   :  { %v1502_v60 = vor.u32 1.1754944e-38, %v1501_v51  ;;  %vm1500_vm12 = vcmp.eq.f32.partialorder %v1499_v41, 8.507059e+37 }
 0x45b   :  { %v1977_v25 = vpop.eup %1976 }
 0x45c   :  { %v1489_v24 = vadd.f32 1.0, %v1977_v25  ;;  %v1979_v6 = vpop.eup %1978 }
 0x45d   :  { %v1491_v3 = vmul.f32 %v1979_v6, %v1488_v47  ;;  %vm1496_vm6 = vweird.f32 %v1979_v6 }
 0x45e   :  { %1980 = vrcp.f32 %v1489_v24  ;;  %vm1497_vm9 = vmor %vm1495_vm7, %vm1496_vm6  ;;  %v1516_v12 = vand.u32 2147483648, %v1489_v24  ;;  %vm1510_vm10 = vweird.f32 %v1489_v24  ;;  %v1514_v15 = vand.u32 2147483647, %v1489_v24 }
 0x45f   :  { %v1492_v45 = vsub.f32 1.0, %v1491_v3 }
 0x460   :  { %v1517_v28 = vor.u32 1.1754944e-38, %v1516_v12  ;;  %vm1515_vm13 = vcmp.eq.f32.partialorder %v1514_v15, 8.507059e+37 }
 0x461   :  { %v1493_v53 = vmul.f32 %v1979_v6, %v1492_v45 }
 0x463   :  { %v1494_v44 = vadd.f32 %v1979_v6, %v1493_v53 }
 0x464   :  { %v1981_v55 = vpop.eup %1980 }
 0x465   :  { %v1506_v7 = vmul.f32 %v1981_v55, %v1489_v24  ;;  %vm1511_vm8 = vweird.f32 %v1981_v55  ;;  %v1498_v17 = vsel %vm1497_vm9, %v1979_v6, %v1494_v44 }
 0x466   :  { %vm1512_vm11 = vmor %vm1510_vm10, %vm1511_vm8  ;;  %v1503_v23 = vsel %vm1500_vm12, %v1502_v60, %v1498_v17 }
 0x467   :  { %v1507_v26 = vsub.f32 1.0, %v1506_v7  ;;  %v1530_v36 = vsub.f32 1.0, %v1503_v23  ;;  %v1528_v59 = vmul.f32 %v1523_v35, %v1503_v23 }
 0x469   :  { %v1508_v2 = vmul.f32 %v1981_v55, %v1507_v26 }
 0x46b   :  { %v1509_v49 = vadd.f32 %v1981_v55, %v1508_v2 }
 0x46d   :  { %v1513_v48 = vsel %vm1512_vm11, %v1981_v55, %v1509_v49 }
 0x46e   :  { %v1518_v5 = vsel %vm1515_vm13, %v1517_v28, %v1513_v48 }
 0x46f   :  { %v1531_v21 = vsub.f32 1.0, %v1518_v5  ;;  %v1529_v8 = vmul.f32 %v1525_v11, %v1518_v5 }
 0x4a7   :  { %v1535_v9 = vpop.permute.xlu2 %1534 }
 0x4a8   :  { %v1540_v54 = vmul.f32 %v1535_v9, %v1530_v36 }
 0x4aa   :  { %v1542_v4 = vadd.f32 %v1540_v54, %v1528_v59 }
 0x4c7   :  { %v1537_v50 = vpop.permute.xlu0 %1536 }
 0x4c8   :  { %v1541_v13 = vmul.f32 %v1537_v50, %v1531_v21 }
 0x4ca   :  { %v1543_v31 = vadd.f32 %v1541_v13, %v1529_v8 }
 0x4cc   :  { %v1544_v42 = vpack.c.bf16 %v1543_v31, %v1542_v4 }
 0x4ce   :  { %1555 = vrot.lane.b32.xlu1 %v1544_v42, %s2063_s18 }
 0x540   :  { %v1556_v30 = vpop.permute.xlu1 %1555 }
 0x541   :  { %1883 = vmatmul.msk.bf16.vlgmr.msra.gmra.mxu3 %vm1458_vm5, %v1556_v30 }
 0x5c4   :  { %v1587_v16 = vpop.f32.mrf.mxu3 }
 0x5c5   :  { %v1588_v32 = vadd.f32 %v1969_v58, %v1587_v16 }
 0x5c7   :  { %v1594_v34 = vrot.slane %v1588_v32, 2  ;;  %v1595_v46 = vrot.slane %v1588_v32, 4  ;;  %v1596_v61 = vrot.slane %v1588_v32, 6  ;;  %1606 = vst [vmem:[#allocation3] sm:$0x3] %v1588_v32 }
 0x5c9   :  { %1607 = vst [vmem:[#allocation3 + $0x2] sm:$0x3] %v1594_v34 }
 0x5ca   :  { %1608 = vst [vmem:[#allocation3 + $0x4] sm:$0x3] %v1595_v46 }
 0x5cb   :  { %1609 = vst [vmem:[#allocation3 + $0x6] sm:$0x3] %v1596_v61 }
 0x5cc   :  { %v1589_v0 = vpop.f32.mrf.mxu3 }
 0x5cd   :  { %v1590_v38 = vadd.f32 %v1969_v58, %v1589_v0 }
 0x5cf   :  { %v1597_v20 = vrot.slane %v1590_v38, 2  ;;  %v1598_v57 = vrot.slane %v1590_v38, 4  ;;  %v1599_v56 = vrot.slane %v1590_v38, 6  ;;  %1610 = vst [vmem:[#allocation3 + $0x8] sm:$0x3] %v1590_v38 }
 0x5d1   :  { %1611 = vst [vmem:[#allocation3 + $0xa] sm:$0x3] %v1597_v20 }
 0x5d2   :  { %1612 = vst [vmem:[#allocation3 + $0xc] sm:$0x3] %v1598_v57 }
 0x5d3   :  { %1613 = vst [vmem:[#allocation3 + $0xe] sm:$0x3] %v1599_v56 }
 0x5d4 LB: > { %v1892_v19 = vor.u32 %v3095_v63, %v3090_v40  ;;  %v1629_v52 = vpack.c.bf16 %v2050_v1, %v2050_v1  ;;  %v1888_v37 = vor.u32 %v3085_v22, %v3080_v29  ;;  %s2068_s8 = smov 64   ;;  %s1884_s23 = sshll.u32 %s2054_s7, 1  ;;  %vm1704_vm4 = vcmask 254976   ;;  %s2054_s7 = sphi %s3104_s7, %s1623_s7   ;;  %v2050_v1 = vphi %v3102_v1, %v1698_v1   ;;  %v2046_v14 = vphi %v3100_v14, %v1692_v14  }
 0x5d5   : > { %s1627_s24 = scalar_lea.vmem [#allocation3], %s1884_s23  ;;  %s2069_s0 = smov 32  }
 0x5d6   : > { %1654 = vmatpush.bf16.msra.mxu0 %v1892_v19  ;;  %1631 = vrot.lane.b32.xlu0 %v1629_v52, %s2068_s8  ;;  %s1703_s25 = scalar_lea.vmem [#allocation4], %s1884_s23  ;;  %s1623_s7 = sadd.s32 1, %s2054_s7  }
 0x5d7   : > { %p1620_p0 = scmp.ge.s32.totalorder %s1623_s7, 8  }
 0x5d8   :  { %v1916_v60 = vld [vmem:[%s3154_s9 + $0x8] sm:$0xff] (%p1620_p0)  ;;  %v1915_v28 = vld [vmem:[%s3154_s9] sm:$0xff] (%p1620_p0)  ;;  %s2070_s28 = smov (%p1620_p0), [#allocation5]   ;;  %s1787_s12 = sshll.u32 (%p1620_p0), %s3156_s11, 4  ;;  %s1788_s12 = int_to_ptr.hbm [resolvable:$true] %s1787_s12 }
 0x5d9   :  { %v2005_v13 = vld [vmem:[%s3155_s10] ss:$0 sm:$0xff] (%p1620_p0)  ;;  %s1785_s5 = sshll.u32 (%p1620_p0), %s2070_s28, 4  ;;  %s2071_s13 = smov (%p1620_p0), 128   ;;  %s1786_s5 = int_to_ptr.vmem [resolvable:$true] %s1785_s5 }
 0x5da   : > { %1655 = vmatpush.bf16.msra.mxu0 %v1888_v37  ;;  %v1628_v25 = vld [vmem:[%s1627_s24] sm:$0x3]  ;;  %s2072_s2 = smov (%p1620_p0), 8  }
 0x648   : > { %v1632_v43 = vpop.permute.xlu0 %1631 }
 0x649   : > { %1893 = vmatmul.msk.bf16.vlgmr.msra.gmra.mxu0 %vm1422_vm2, %v1632_v43 }
 0x64a   :  { %1771 = vmatpush.bf16.msra.mxu0 (%p1620_p0), %v1916_v60 }
 0x64e   :  { %1772 = vmatpush.bf16.msra.mxu0 (%p1620_p0), %v1915_v28 }
 0x6c6   : > { %v1657_v47 = vpop.f32.mrf.mxu0 }
 0x6c7   : > { %v1661_v24 = vadd.f32 %v1657_v47, %v1628_v25 }
 0x6c9   : > { %1997 = vtanh.f32 %v1661_v24  ;;  %v1894_v3 = vmul.f32 -1.442695, %v1661_v24 }
 0x6cb   : > { %1999 = vpow2.f32 %v1894_v3 }
 0x6ce   : > { %v1659_v6 = vpop.f32.mrf.mxu0 }
 0x6cf   : > { %v1998_v55 = vpop.eup %1997 }
 0x6d0   : > { %1684 = vrot.lane.b32.xlu0 %v1998_v55, %s2069_s0 }
 0x6d1   : > { %v2000_v18 = vpop.eup %1999 }
 0x6d2   : > { %v1665_v62 = vadd.f32 1.0, %v2000_v18 }
 0x6d4   : > { %2001 = vrcp.f32 %v1665_v62  ;;  %v1677_v10 = vand.u32 2147483648, %v1665_v62  ;;  %vm1671_vm15 = vweird.f32 %v1665_v62  ;;  %v1675_v53 = vand.u32 2147483647, %v1665_v62 }
 0x6d6   : > { %v1678_v33 = vor.u32 1.1754944e-38, %v1677_v10  ;;  %vm1676_vm1 = vcmp.eq.f32.partialorder %v1675_v53, 8.507059e+37 }
 0x6da   : > { %v2002_v7 = vpop.eup %2001 }
 0x6db   : > { %v1667_v39 = vmul.f32 %v2002_v7, %v1665_v62  ;;  %vm1672_vm14 = vweird.f32 %v2002_v7 }
 0x6dc   : > { %vm1673_vm0 = vmor %vm1671_vm15, %vm1672_vm14 }
 0x6dd   : > { %v1668_v45 = vsub.f32 1.0, %v1667_v39 }
 0x6df   : > { %v1669_v27 = vmul.f32 %v2002_v7, %v1668_v45 }
 0x6e1   : > { %v1670_v26 = vadd.f32 %v2002_v7, %v1669_v27 }
 0x6e3   : > { %v1674_v2 = vsel %vm1673_vm0, %v2002_v7, %v1670_v26 }
 0x6e4   : > { %v1679_v51 = vsel %vm1676_vm1, %v1678_v33, %v1674_v2 }
 0x6e5   : > { %v1682_v49 = vmul.f32 %v2046_v14, %v1679_v51 }
 0x742   : > { %v1685_v44 = vpop.permute.xlu0 %1684 }
 0x743   : > { %v1687_v41 = vmul.f32 %v1685_v44, %v1679_v51 }
 0x745   : > { %1689 = vrot.lane.b32.xlu1 %v1687_v41, %s2069_s0 }
 0x7b7   : > { %v1690_v12 = vpop.permute.xlu1 %1689 }
 0x7b8   : > { %v1692_v14 = vadd.f32 %v1690_v12, %v1682_v49  }
 0x7ba   : > { %2003 = vtanh.f32 %v1692_v14 }
 0x7c0   : > { %v2004_v17 = vpop.eup %2003 }
 0x7c1   : > { %1695 = vrot.lane.b32.xlu1 %v2004_v17, %s2069_s0 }
 0x833   : > { %v1696_v15 = vpop.permute.xlu1 %1695 }
 0x834   : > { %v1698_v1 = vmul.f32 %v1696_v15, %v1679_v51  }
 0x836   : > { %1700 = vrot.lane.b32.xlu2 %v1698_v1, %s2068_s8 }
 0x88d   :  { %1622 = sbr.rel (!%p1620_p0) target bundleno = 1492 (0x5d4), region = 85 }
 0x890   : > { %v1701_v35 = vpop.permute.xlu2 %1700 }
 0x891   : > { %1705 = vst.msk [vmem:[%s1703_s25] sm:$0x3] %vm1704_vm4, %v1701_v35 }
 0x898   :  { %v1706_v48 = vld [vmem:[#allocation4] sm:$0x3]  ;;  %v1707_v23 = vld [vmem:[#allocation4 + $0x2] sm:$0x3]  ;;  %v1708_v9 = vld [vmem:[#allocation4 + $0x4] sm:$0x3] }
 0x899   :  { %v1709_v5 = vld [vmem:[#allocation4 + $0x6] sm:$0x3]  ;;  %1722 = vst [vmem:[#allocation1] ss:$4 sm:$0xff] %v1706_v48  ;;  %v1710_v36 = vld [vmem:[#allocation4 + $0x8] sm:$0x3] }
 0x89a   :  { %1724 = vst [vmem:[#allocation1 + $0x1] ss:$4 sm:$0xff] %v1707_v23  ;;  %v1711_v54 = vld [vmem:[#allocation4 + $0xa] sm:$0x3]  ;;  %v1712_v21 = vld [vmem:[#allocation4 + $0xc] sm:$0x3] }
 0x89b   :  { %1726 = vst [vmem:[#allocation1 + $0x2] ss:$4 sm:$0xff] %v1708_v9  ;;  %v1713_v11 = vld [vmem:[#allocation4 + $0xe] sm:$0x3] }
 0x89c   :  { %1728 = vst [vmem:[#allocation1 + $0x3] ss:$4 sm:$0xff] %v1709_v5 }
 0x89d   :  { %1730 = vst [vmem:[#allocation1 + $0x20] ss:$4 sm:$0xff] %v1710_v36 }
 0x89e   :  { %1732 = vst [vmem:[#allocation1 + $0x21] ss:$4 sm:$0xff] %v1711_v54 }
 0x89f   :  { %1734 = vst [vmem:[#allocation1 + $0x22] ss:$4 sm:$0xff] %v1712_v21 }
 0x8a0   :  { %1736 = vst [vmem:[#allocation1 + $0x23] ss:$4 sm:$0xff] %v1713_v11 }
 0x8a3   :  { %v1737_v50 = vld.sshfl [vmem:[#allocation1] sm:$0xff pattern:$0x73625140] }
 0x8a7   :  { %v1738_v59 = vld.sshfl [vmem:[#allocation1 + $0x20] sm:$0xff pattern:$0x73625140] }
 0x8a8   :  { %v1741_v8 = vpack.c.bf16 %v1738_v59, %v1737_v50 }
 0x8aa   :  { %1903 = vmatmul.msk.bf16.vlgmr.msra.gmra.mxu0 %vm1422_vm2, %v1741_v8 }
 0x927   :  { %v1774_v4 = vpop.f32.mrf.mxu0 }
 0x928   :  { %v1775_v31 = vadd.f32 %v2005_v13, %v1774_v4 }
 0x92a   :  { %1779 = vst.msk [vmem:[#allocation5] sm:$0xff] %vm200_vm3, %v1775_v31 }
 0x92f   :  { %v1776_v42 = vpop.f32.mrf.mxu0 }
 0x930   :  { %v1777_v30 = vadd.f32 %v2005_v13, %v1776_v42 }
 0x932   :  { %1780 = vst.msk [vmem:[#allocation5 + $0x8] sm:$0xff] %vm200_vm3, %v1777_v30 }
 0x933   :  { %1793 = dma.vmem_to_hbm [thread:$0]  %s1786_s5, 256, %s1788_s12, [#allocation6], %s2071_s13, %s2071_s13, %s2072_s2  }
 0x934   :  { %2042 = dma.done.wait [#allocation6], 256  }
 0x935   :  { %2043 = vsyncadd [#allocation6], 4294967040 }
 0x936   :  { %1798 = vsyncpa [#allocation6], 1 }

</bundles_post_ra>
